<compile_context>
chip_gen: v6e
topology: v6e:2x2x1
jax: 0.10.0
libtpu: 0.0.40
codegen_flags: <defaults>
</compile_context>

<pallas_src>
import functools

import jax
import jax.numpy as jnp
from jax.experimental import pallas as pl
from jax.experimental.pallas import tpu as pltpu


def _round_up(x, m):
    return ((x + m - 1) // m) * m


def _vmem_capacity_bytes():
    try:
        return int(pltpu.get_tpu_info().vmem_capacity_bytes)
    except Exception:
        return 64 * 1024 * 1024  # conservative: v7x per-TensorCore VMEM


def _mlp_tile(x_ref, w1_ref, b1_ref, w2_ref):
    """relu(x @ W1 + b1) @ W2 for one (tm, C) row tile; f32 result (no b2)."""
    x = x_ref[...].astype(jnp.bfloat16)                       # cast in-kernel
    h = jnp.dot(x, w1_ref[...], preferred_element_type=jnp.float32)
    h = jnp.maximum(h + b1_ref[...], 0.0)                     # bias + ReLU in f32
    return jnp.dot(h.astype(jnp.bfloat16), w2_ref[...],
                   preferred_element_type=jnp.float32)


def ffn_resident_kernel(*refs, has_mask):
    # Weights fully VMEM-resident: 1-D grid over row tiles, no accumulator.
    if has_mask:
        x_ref, w1_ref, b1_ref, w2_ref, b2_ref, mask_ref, o_ref = refs
    else:
        x_ref, w1_ref, b1_ref, w2_ref, b2_ref, o_ref = refs
        mask_ref = None
    y = _mlp_tile(x_ref, w1_ref, b1_ref, w2_ref) + b2_ref[...]
    if mask_ref is not None:
        y = y * mask_ref[...]                                  # fused dropout
    o_ref[...] = y.astype(o_ref.dtype)


def ffn_streamed_kernel(*refs, has_mask):
    # Fallback: stream (C, th)/(th, C) weight slices, accumulate over H.
    if has_mask:
        x_ref, w1_ref, b1_ref, w2_ref, b2_ref, mask_ref, o_ref, acc_ref = refs
    else:
        x_ref, w1_ref, b1_ref, w2_ref, b2_ref, o_ref, acc_ref = refs
        mask_ref = None
    h_idx = pl.program_id(1)

    @pl.when(h_idx == 0)
    def _init():
        acc_ref[...] = jnp.zeros_like(acc_ref)

    acc_ref[...] += _mlp_tile(x_ref, w1_ref, b1_ref, w2_ref)

    @pl.when(h_idx == pl.num_programs(1) - 1)
    def _finalize():
        y = acc_ref[...] + b2_ref[...]
        if mask_ref is not None:
            y = y * mask_ref[...]
        o_ref[...] = y.astype(o_ref.dtype)


def feed_forward(x, w1, b1, w2, b2, *, tm=512, training=False, dropout_p=0.2,
                 rng_key=None, out_dtype=None, force_stream=False):
    """Fused MLP.  x: (B, T, C); w1: (C, H); w2: (H, C); returns (B, T, C)."""
    B, T, C = x.shape
    H = w1.shape[1]
    M = B * T
    out_dtype = x.dtype if out_dtype is None else out_dtype

    # ---- row tiling: big tiles, but keep >= 2 tiles so both v7x cores work ----
    tm = _round_up(max(8, min(tm, _round_up(M, 8))), 8)
    if pl.cdiv(M, tm) < 2 and M > 8:
        tm = _round_up(pl.cdiv(M, 2), 8)
    num_tiles = pl.cdiv(M, tm)
    M_pad = num_tiles * tm

    x2 = x.reshape(M, C)
    if M_pad != M:
        x2 = jnp.pad(x2, ((0, M_pad - M), (0, 0)))

    # bf16 MXU weights; biases stay f32 (added in f32 inside the kernel).
    w1b = w1.astype(jnp.bfloat16)
    w2b = w2.astype(jnp.bfloat16)
    b1f = b1.reshape(1, H).astype(jnp.float32)
    b2f = b2.reshape(1, C).astype(jnp.float32)

    # ---- dropout mask (host-side PRNG, fused multiply in-kernel) ----
    apply_dropout = bool(training) and float(dropout_p) > 0.0
    mask = None
    if apply_dropout:
        if rng_key is None:
            rng_key = jax.random.PRNGKey(0)
        keep_prob = 1.0 - float(dropout_p)
        mask = (jax.random.bernoulli(rng_key, keep_prob, (M_pad, C))
                .astype(jnp.float32) * (1.0 / keep_prob))

    # ---- VMEM budgeting & residency decision ----
    cap = _vmem_capacity_bytes()
    in_item = jnp.dtype(x.dtype).itemsize
    out_item = jnp.dtype(out_dtype).itemsize
    mask_item = 4 if apply_dropout else 0
    tile_io = 2 * tm * C * (in_item + out_item + mask_item)        # dbl-buffered
    w_full = (C * H + H * C) * 2 + (H + C) * 4                     # bf16 W, f32 b
    inter_resident = tm * H * 6 + tm * C * 8                       # h f32+bf16 etc.
    need_resident = tile_io + 2 * w_full + inter_resident + (4 << 20)
    resident = (not force_stream) and (need_resident <= cap - (8 << 20))

    flops = 4 * M_pad * C * H
    if resident:
        grid = (num_tiles,)
        in_specs = [
            pl.BlockSpec((tm, C), lambda i: (i, 0)),   # x row tile
            pl.BlockSpec((C, H), lambda i: (0, 0)),    # W1 resident
            pl.BlockSpec((1, H), lambda i: (0, 0)),    # b1 resident
            pl.BlockSpec((H, C), lambda i: (0, 0)),    # W2 resident
            pl.BlockSpec((1, C), lambda i: (0, 0)),    # b2 resident
        ]
        out_spec = pl.BlockSpec((tm, C), lambda i: (i, 0))
        if apply_dropout:
            in_specs.append(pl.BlockSpec((tm, C), lambda i: (i, 0)))
        scratch = []
        dims = ("parallel",)
        kernel = functools.partial(ffn_resident_kernel, has_mask=apply_dropout)
        vmem_need = need_resident
        weight_traffic = (C * H + H * C) * 2 + (H + C) * 4
    else:
        # H-tile: prefer 256-multiples (v6e/v7x MXU); must divide H.
        th = H
        for cand in (512, 256, 128):
            if H % cand == 0:
                th = cand
                break
        grid = (num_tiles, H // th)
        in_specs = [
            pl.BlockSpec((tm, C), lambda i, h: (i, 0)),
            pl.BlockSpec((C, th), lambda i, h: (0, h)),
            pl.BlockSpec((1, th), lambda i, h: (0, h)),
            pl.BlockSpec((th, C), lambda i, h: (h, 0)),
            pl.BlockSpec((1, C), lambda i, h: (0, 0)),
        ]
        out_spec = pl.BlockSpec((tm, C), lambda i, h: (i, 0))
        if apply_dropout:
            in_specs.append(pl.BlockSpec((tm, C), lambda i, h: (i, 0)))
        scratch = [pltpu.VMEM((tm, C), jnp.float32)]
        dims = ("parallel", "arbitrary")
        kernel = functools.partial(ffn_streamed_kernel, has_mask=apply_dropout)
        w_slice = (C * th + th * C) * 2 + (th + C) * 4
        vmem_need = (tile_io + 2 * w_slice + tm * th * 6 + tm * C * 8
                     + tm * C * 4 + (4 << 20))
        weight_traffic = ((C * H + H * C) * 2 + (H + C) * 4) * num_tiles

    vmem_limit = max(vmem_need, 32 * 1024 * 1024)
    vmem_limit = min(vmem_limit, cap - 4 * 1024 * 1024)
    vmem_limit = int(max(vmem_limit, vmem_need))

    bytes_accessed = (M_pad * C * in_item + weight_traffic
                      + (M_pad * C * 4 if apply_dropout else 0)
                      + M_pad * C * out_item)

    inputs = [x2, w1b, b1f, w2b, b2f]
    if apply_dropout:
        inputs.append(mask)

    out = pl.pallas_call(
        kernel,
        out_shape=jax.ShapeDtypeStruct((M_pad, C), out_dtype),
        grid_spec=pltpu.PrefetchScalarGridSpec(
            num_scalar_prefetch=0,
            grid=grid,
            in_specs=in_specs,
            out_specs=out_spec,
            scratch_shapes=scratch,
        ),
        compiler_params=pltpu.CompilerParams(
            dimension_semantics=dims,
            vmem_limit_bytes=vmem_limit,
        ),
        cost_estimate=pl.CostEstimate(
            flops=flops, transcendentals=0, bytes_accessed=bytes_accessed),
    )(*inputs)

    return out[:M].reshape(B, T, C)


if __name__ == "__main__":
    # Shapes consistent with the module: n_embd = 384, hidden = 4 * n_embd.
    B, T = 2, 8
    C = 384
    H = 4 * C

    key = jax.random.PRNGKey(0)
    kx, k1, k2, k3, k4, kd = jax.random.split(key, 6)

    x = jax.random.normal(kx, (B, T, C), dtype=jnp.float32)
    # PyTorch nn.Linear weight is (out, in); we store the transposed (in, out).
    w1 = jax.random.normal(k1, (C, H), dtype=jnp.float32) * 0.02
    b1 = jax.random.normal(k2, (H,), dtype=jnp.float32) * 0.02
    w2 = jax.random.normal(k3, (H, C), dtype=jnp.float32) * 0.02
    b2 = jax.random.normal(k4, (C,), dtype=jnp.float32) * 0.02

    def ref_ffn(xin, bf16_ops=True):
        f32 = jnp.float32
        xq = xin.reshape(-1, C)
        w1q, w2q = w1, w2
        if bf16_ops:
            xq = xq.astype(jnp.bfloat16).astype(f32)
            w1q = w1q.astype(jnp.bfloat16).astype(f32)
            w2q = w2q.astype(jnp.bfloat16).astype(f32)
        h = jnp.maximum(xq @ w1q + b1[None, :], 0.0)
        if bf16_ops:
            h = h.astype(jnp.bfloat16).astype(f32)
        y = h @ w2q + b2[None, :]
        return y.reshape(xin.shape)

    # --- eval mode (Dropout is identity), weight-resident fast path ---
    y = feed_forward(x, w1, b1, w2, b2, training=False)
    jax.block_until_ready(y)
    assert jnp.allclose(y, ref_ffn(x, bf16_ops=True), atol=5e-3, rtol=5e-3), \
        "mismatch vs bf16 reference"
    assert jnp.allclose(y, ref_ffn(x, bf16_ops=False), atol=3e-2, rtol=3e-2), \
        "mismatch vs f32 reference"

    # --- padded / multi-row-tile path (M not a multiple of the row tile) ---
    T2 = 150
    xb = jax.random.normal(kx, (B, T2, C), dtype=jnp.float32)
    yb = feed_forward(xb, w1, b1, w2, b2, training=False)
    jax.block_until_ready(yb)
    assert jnp.allclose(yb, ref_ffn(xb, bf16_ops=True), atol=5e-3, rtol=5e-3), \
        "mismatch vs bf16 reference (padded path)"

    # --- H-streamed fallback path (forced) ---
    ys = feed_forward(x, w1, b1, w2, b2, training=False, force_stream=True)
    jax.block_until_ready(ys)
    assert jnp.allclose(ys, ref_ffn(x, bf16_ops=True), atol=5e-3, rtol=5e-3), \
        "mismatch vs bf16 reference (streamed path)"

    # --- training mode: Dropout(0.2) fused as a mask multiply in the kernel ---
    y_tr = feed_forward(x, w1, b1, w2, b2, training=True, dropout_p=0.2,
                        rng_key=kd)
    jax.block_until_ready(y_tr)
    keep_prob = 0.8
    scaled = y * (1.0 / keep_prob)
    dropped = (y_tr == 0.0)
    matched = jnp.isclose(y_tr, scaled, atol=1e-5, rtol=1e-5)
    assert bool(jnp.all(matched | dropped)), "dropout output not in {0, y/(1-p)}"
    frac_kept = float(jnp.mean((~dropped).astype(jnp.float32)))
    assert 0.65 < frac_kept < 0.92, f"unexpected dropout keep fraction {frac_kept}"

    print("KERNEL_OK")
</pallas_src>

<mosaic_0001>
module attributes {stable_mosaic.version = 11 : i64} {
  func.func @ffn_resident_kernel(%arg0: i32, %arg1: memref<8x384xf32, #tpu.memory_space<vmem>>, %arg2: memref<384x1536xbf16, #tpu.memory_space<vmem>>, %arg3: memref<1x1536xf32, #tpu.memory_space<vmem>>, %arg4: memref<1536x384xbf16, #tpu.memory_space<vmem>>, %arg5: memref<1x384xf32, #tpu.memory_space<vmem>>, %arg6: memref<8x384xf32, #tpu.memory_space<vmem>>) attributes {dimension_semantics = [#tpu.dimension_semantics<parallel>], iteration_bounds = array<i64: 2>, scalar_prefetch = 0 : i64, scratch_operands = 0 : i64, tpu.core_type = #tpu.core_type<tc>, window_params = [{transform_indices = @transform_0, window_bounds = array<i64: 8, 384>}, {pipeline_mode = #tpu.pipeline_mode<synchronous>, transform_indices = @transform_1, window_bounds = array<i64: 384, 1536>}, {pipeline_mode = #tpu.pipeline_mode<synchronous>, transform_indices = @transform_2, window_bounds = array<i64: 1, 1536>}, {pipeline_mode = #tpu.pipeline_mode<synchronous>, transform_indices = @transform_3, window_bounds = array<i64: 1536, 384>}, {pipeline_mode = #tpu.pipeline_mode<synchronous>, transform_indices = @transform_4, window_bounds = array<i64: 1, 384>}, {transform_indices = @transform_5, window_bounds = array<i64: 8, 384>}]} {
    %c0 = arith.constant 0 : index
    %c0_0 = arith.constant 0 : index
    %0 = vector.load %arg1[%c0, %c0_0] : memref<8x384xf32, #tpu.memory_space<vmem>>, vector<8x384xf32>
    %1 = arith.truncf %0 : vector<8x384xf32> to vector<8x384xbf16>
    %c0_1 = arith.constant 0 : index
    %c0_2 = arith.constant 0 : index
    %2 = vector.load %arg2[%c0_1, %c0_2] : memref<384x1536xbf16, #tpu.memory_space<vmem>>, vector<384x1536xbf16>
    %cst = arith.constant dense<0.000000e+00> : vector<8x1536xf32>
    %3 = tpu.matmul %1, %2, %cst {dimension_numbers = #tpu.dot_dimension_numbers<[1], [0], [0], [1], [0, 0, 1, 1], [], []>} : vector<8x384xbf16>, vector<384x1536xbf16>, vector<8x1536xf32> -> vector<8x1536xf32>
    %c0_3 = arith.constant 0 : index
    %c0_4 = arith.constant 0 : index
    %4 = vector.load %arg3[%c0_3, %c0_4] : memref<1x1536xf32, #tpu.memory_space<vmem>>, vector<1x1536xf32>
    %5 = vector.broadcast %4 : vector<1x1536xf32> to vector<8x1536xf32>
    %6 = arith.addf %3, %5 : vector<8x1536xf32>
    %cst_5 = arith.constant 0.000000e+00 : f32
    %7 = vector.broadcast %cst_5 : f32 to vector<8x1536xf32>
    %8 = arith.maximumf %6, %7 : vector<8x1536xf32>
    %9 = arith.truncf %8 : vector<8x1536xf32> to vector<8x1536xbf16>
    %c0_6 = arith.constant 0 : index
    %c0_7 = arith.constant 0 : index
    %10 = vector.load %arg4[%c0_6, %c0_7] : memref<1536x384xbf16, #tpu.memory_space<vmem>>, vector<1536x384xbf16>
    %cst_8 = arith.constant dense<0.000000e+00> : vector<8x384xf32>
    %11 = tpu.matmul %9, %10, %cst_8 {dimension_numbers = #tpu.dot_dimension_numbers<[1], [0], [0], [1], [0, 0, 1, 1], [], []>} : vector<8x1536xbf16>, vector<1536x384xbf16>, vector<8x384xf32> -> vector<8x384xf32>
    %c0_9 = arith.constant 0 : index
    %c0_10 = arith.constant 0 : index
    %12 = vector.load %arg5[%c0_9, %c0_10] : memref<1x384xf32, #tpu.memory_space<vmem>>, vector<1x384xf32>
    %13 = vector.broadcast %12 : vector<1x384xf32> to vector<8x384xf32>
    %14 = arith.addf %11, %13 : vector<8x384xf32>
    %c0_11 = arith.constant 0 : index
    %c0_12 = arith.constant 0 : index
    %15 = vector.load %arg6[%c0_11, %c0_12] : memref<8x384xf32, #tpu.memory_space<vmem>>, vector<8x384xf32>
    tpu.vector_store %arg6[%c0_11, %c0_12], %14 {strides = array<i32>} : memref<8x384xf32, #tpu.memory_space<vmem>>, vector<8x384xf32>,
    return
  }
  func.func @transform_0(%arg0: i32) -> (i32, i32) {
    %c0_i32 = arith.constant 0 : i32
    %c0_i32_0 = arith.constant 0 : i32
    return %arg0, %c0_i32 : i32, i32
  }
  func.func @transform_1(%arg0: i32) -> (i32, i32) {
    %c0_i32 = arith.constant 0 : i32
    %c0_i32_0 = arith.constant 0 : i32
    %c0_i32_1 = arith.constant 0 : i32
    return %c0_i32, %c0_i32_0 : i32, i32
  }
  func.func @transform_2(%arg0: i32) -> (i32, i32) {
    %c0_i32 = arith.constant 0 : i32
    %c0_i32_0 = arith.constant 0 : i32
    %c0_i32_1 = arith.constant 0 : i32
    return %c0_i32, %c0_i32_0 : i32, i32
  }
  func.func @transform_3(%arg0: i32) -> (i32, i32) {
    %c0_i32 = arith.constant 0 : i32
    %c0_i32_0 = arith.constant 0 : i32
    %c0_i32_1 = arith.constant 0 : i32
    return %c0_i32, %c0_i32_0 : i32, i32
  }
  func.func @transform_4(%arg0: i32) -> (i32, i32) {
    %c0_i32 = arith.constant 0 : i32
    %c0_i32_0 = arith.constant 0 : i32
    %c0_i32_1 = arith.constant 0 : i32
    return %c0_i32, %c0_i32_0 : i32, i32
  }
  func.func @transform_5(%arg0: i32) -> (i32, i32) {
    %c0_i32 = arith.constant 0 : i32
    %c0_i32_0 = arith.constant 0 : i32
    return %arg0, %c0_i32 : i32, i32
  }
}

</mosaic_0001>

<bundles_post_ra>
// kernel: tpu_custom_call.1
= control target key start
LH: loop header
LB: loop body
LE: loop exit
PB: predicated region body
PF: predicated region fallthrough
CT: control target
= control target key end

     0   :  { %10 = vsyncpa [#allocation3], 0  ;;  %s7421_s0 = inlined_call_operand.hbm [shape: f32[16,384], index: 0, kind: input, shape index: {}]   ;;  %s7422_s1 = inlined_call_operand.hbm [shape: bf16[384,1536], index: 1, kind: input, shape index: {}]   ;;  %s7423_s2 = inlined_call_operand.hbm [shape: f32[1,1536], index: 2, kind: input, shape index: {}]   ;;  %s7424_s3 = inlined_call_operand.hbm [shape: bf16[1536,384], index: 3, kind: input, shape index: {}]   ;;  %s7425_s4 = inlined_call_operand.hbm [shape: f32[1,384], index: 4, kind: input, shape index: {}]   ;;  %s7426_s5 = inlined_call_operand.hbm [shape: f32[16,384], index: 5, kind: output, shape index: {}]  }
   0x1   :  { %12 = vsyncpa [#allocation3 + $0x1], 0 }
   0x2   :  { %13 = vsyncpa [#allocation6], 0 }
   0x3   :  { %14 = vsyncpa [#allocation9], 0 }
   0x4   :  { %15 = vsyncpa [#allocation4], 0 }
   0x5   :  { %17 = vsyncpa [#allocation4 + $0x1], 0  ;;  %s7043_s18 = smov 0   ;;  %s7045_s19 = smov 0  }
   0x6   :  { %s7047_s20 = smov 0   ;;  %s7049_s21 = smov 0  }
   0x7 LB: > { %s7002_s22 = smov [#allocation5]   ;;  %s7064_s24 = sadd.s32 4294967295, %s7000_s21   ;;  %s7000_s21 = sphi %s7049_s21, %s7449_s21   ;;  %s6996_s20 = sphi %s7047_s20, %s7448_s20   ;;  %s6992_s19 = sphi %s7045_s19, %s7447_s19   ;;  %s6988_s18 = sphi %s7043_s18, %s7446_s18  }
   0x8   : > { %s176_s23 = sshll.u32 %s7002_s22, 4  ;;  %p5160_p0 = scmp.ge.s32.totalorder %s7000_s21, 1  ;;  %s177_s23 = int_to_ptr.vmem [resolvable:$true] %s176_s23 }
   0x9   : > { %p7427_p1 = scmp.eq.s32.totalorder %s7064_s24, 0  ;;  %p164_p2 = scmp.lt.s32.totalorder %s7000_s21, 3 }
   0xa   : > { %s7003_s26 = smov [#allocation8]   ;;  %s7004_s29 = smov [#allocation7]  }
   0xb   : > { %p7069_p3 = pnand %p5160_p0, %p164_p2  ;;  %s200_s27 = sshll.u32 %s7003_s26, 4  ;;  %s7082_s27 = int_to_ptr.vmem [resolvable:$true] %s200_s27 }
   0xc   : > { %s7084_s30 = sshll.u32 %s7004_s29, 4  ;;  %s6807_s6 = scalar_lea.vmem %s177_s23, 36864  ;;  %s191_s30 = int_to_ptr.vmem [resolvable:$true] %s7084_s30 }
   0xd   : > { %s7431_s25 = scalar_select %p7069_p3, 1, 0 }
   0xe   : > { %p5907_p5 = pneg %p7069_p3  ;;  %p6808_p8 = scmp.ne.s32.totalorder %s177_s23, %s6807_s6 }
   0xf   : > { %p6815_p11 = scmp.lt.s32.totalorder %s177_s23, %s177_s23  ;;  %p6816_p12 = scmp.lt.s32.totalorder %s6807_s6, %s6807_s6 }
  0x10   : > { %p7078_p6 = pnand %p5907_p5, %p7427_p1 }
  0x11   : > { %p6817_p13 = por %p6816_p12, %p6815_p11 }
  0x12   : > { %p6798_p7 = pneg %p7078_p6 }
  0x14   : > { %p6810_p9 = pnand %p6808_p8, %p6798_p7 }
  0x16   : > { %p6811_p10 = pneg %p6810_p9 }
  0x18   : > { %p6818_p0 = pnand %p6817_p13, %p6811_p10 }
  0x1a   : > { %6821 = shalt.err (!%p6818_p0)
}
  0x1b   : > { %s7005_s7 = smov 768   ;;  %s7006_s8 = smov 48  }
  0x1c   : > { %5910 = dma.hbm_to_vmem [thread:$0]  (!%p7078_p6), %s7422_s1, 36864, %s177_s23, [#allocation6], %s7005_s7, %s7005_s7, %s7006_s8  }
  0x1d   : > { %s6833_s11 = scalar_lea.vmem %s7082_s27, 36864  ;;  %p6841_p9 = scmp.lt.s32.totalorder %s7082_s27, %s7082_s27 }
  0x1e   : > { %p6834_p2 = scmp.ne.s32.totalorder %s7082_s27, %s6833_s11  ;;  %p6842_p10 = scmp.lt.s32.totalorder %s6833_s11, %s6833_s11 }
  0x20   : > { %p6836_p5 = pnand %p6834_p2, %p6798_p7  ;;  %p6843_p11 = por %p6842_p10, %p6841_p9 }
  0x22   : > { %p6837_p8 = pneg %p6836_p5 }
  0x24   : > { %p6844_p12 = pnand %p6843_p11, %p6837_p8 }
  0x26   : > { %6847 = shalt.err (!%p6844_p12)
}
  0x27   : > { %s7007_s12 = smov 192   ;;  %s7008_s13 = smov 12  }
  0x28   : > { %5916 = dma.hbm_to_vmem [thread:$0]  (!%p7078_p6), %s7424_s3, 36864, %s7082_s27, [#allocation9], %s7007_s12, %s7007_s12, %s7008_s13  }
  0x29   : > { %s6859_s16 = scalar_lea.vmem %s191_s30, 192  ;;  %p6867_p5 = scmp.lt.s32.totalorder %s191_s30, %s191_s30 }
  0x2a   : > { %p6860_p13 = scmp.ne.s32.totalorder %s191_s30, %s6859_s16  ;;  %p6868_p8 = scmp.lt.s32.totalorder %s6859_s16, %s6859_s16 }
  0x2c   : > { %p6862_p0 = pnand %p6860_p13, %p6798_p7  ;;  %p6869_p9 = por %p6868_p8, %p6867_p5 }
  0x2e   : > { %p6863_p2 = pneg %p6862_p0 }
  0x30   : > { %p6870_p10 = pnand %p6869_p9, %p6863_p2 }
  0x32   : > { %6873 = shalt.err (!%p6870_p10)
}
  0x33   : > { %5913 = dma.hbm_to_vmem [thread:$0]  (!%p7078_p6), %s7423_s2, 192, %s191_s30, [#allocation6]  }
  0x34   : > { %s7009_s23 = smov [#allocation10]  }
  0x35   : > { %s214_s26 = sshll.u32 %s7009_s23, 4  ;;  %s215_s26 = int_to_ptr.vmem [resolvable:$true] %s214_s26 }
  0x36   : > { %s6885_s27 = scalar_lea.vmem %s215_s26, 48  ;;  %s6892_s29 = scalar_lea.vmem %s215_s26, 64 }
  0x37   : > { %p6886_p11 = scmp.ne.s32.totalorder %s215_s26, %s6885_s27  ;;  %p6893_p0 = scmp.lt.s32.totalorder %s215_s26, %s215_s26 }
  0x38   : > { %p6894_p2 = scmp.lt.s32.totalorder %s6892_s29, %s6885_s27 }
  0x39   : > { %p6888_p12 = pnand %p6886_p11, %p6798_p7 }
  0x3a   : > { %p6895_p5 = por %p6894_p2, %p6893_p0 }
  0x3b   : > { %p6889_p13 = pneg %p6888_p12 }
  0x3d   : > { %p6896_p8 = pnand %p6895_p5, %p6889_p13 }
  0x3f   : > { %6899 = shalt.err (!%p6896_p8)
}
  0x40   : > { %5919 = dma.hbm_to_vmem [thread:$0]  (!%p7078_p6), %s7425_s4, 48, %s215_s26, [#allocation9]  }
  0x41   : > { %s5159_s30 = sadd.s32 4294967294, %s7000_s21   ;;  %s7128_s28 = sadd.s32 1, %s7000_s21  }
  0x42   : > { %s27_s8 = ssub.s32 %s7000_s21, %s7128_s28  ;;  %s30_s9 = sadd.s32 1, %s6996_s20 }
  0x43   : > { %p28_p7 = scmp.eq.s32.totalorder %s27_s8, 0  ;;  %p37_p9 = scmp.ne.s32.totalorder %s6996_s20, %s6992_s19 }
  0x44   : > { %p38_p10 = scmp.eq.s32.totalorder %s7000_s21, 0  ;;  %p43_p11 = scmp.ne.s32.totalorder %s6992_s19, %s6988_s18 }
  0x45   : > { %s7139_s10 = scalar_select %p28_p7, %s6996_s20, %s30_s9  }
  0x46   : > { %p39_p12 = por %p38_p10, %p37_p9  ;;  %p7143_p13 = por %p7427_p1, %p43_p11 }
  0x47   : > { %p151_p6 = scmp.eq.s32.totalorder %s7064_s24, 1  ;;  %p157_p0 = scmp.eq.s32.totalorder %s5159_s30, 1 }
  0x48   : > { %s7433_s11 = scalar_select %p7143_p13, 1, 0 }
  0x49   : > { %p5932_p2 = scmp.lt.s32.totalorder %s7000_s21, 2  ;;  %s225_s12 = sand.u32 1, %s6996_s20  }
  0x4a   : > { %p7150_p5 = por %p151_p6, %p37_p9  ;;  %p7154_p8 = por %p157_p0, %p43_p11 }
  0x4b   : > { %s5883_s15 = smul.u32 24, %s225_s12  ;;  %p7159_p7 = pnand %p5932_p2, %p39_p12 }
  0x4c   : > { %s7434_s13 = scalar_select %p7150_p5, 1, 0 }
  0x4d   : > { %s7435_s14 = scalar_select %p7154_p8, 1, 0 }
  0x4e   : > { %s5884_s16 = smul.u32 384, %s7000_s21  ;;  %s229_s27 = scalar_lea.vmem [#allocation2], %s5883_s15 }
  0x4f   : > { %s237_s29 = sshll.u32 %s229_s27, 4  ;;  %s226_s6 = scalar_lea.sflag [#allocation3], %s225_s12  ;;  %s238_s29 = int_to_ptr.vmem [resolvable:$true] %s237_s29 }
  0x50   : > { %s7166_s26 = scalar_lea.hbm %s7421_s0, %s5884_s16  ;;  %p6902_p10 = pneg %p7159_p7 }
  0x51   : > { %s6900_s7 = scalar_lea.hbm %s7166_s26, 384  ;;  %s6905_s9 = scalar_lea.hbm %s7421_s0, 768 }
  0x52   : > { %p6901_p9 = scmp.ne.s32.totalorder %s7166_s26, %s6900_s7  ;;  %p6906_p6 = scmp.lt.s32.totalorder %s7166_s26, %s7421_s0 }
  0x53   : > { %p6907_p0 = scmp.lt.s32.totalorder %s6905_s9, %s6900_s7 }
  0x54   : > { %p6903_p11 = pnand %p6902_p10, %p6901_p9 }
  0x55   : > { %p6908_p2 = por %p6907_p0, %p6906_p6 }
  0x56   : > { %p6904_p12 = pneg %p6903_p11 }
  0x58   : > { %p6909_p4 = pnand %p6908_p2, %p6904_p12 }
  0x5a   : > { %6912 = shalt.err (!%p6909_p4)
}
  0x5b   : > { %s6913_s15 = scalar_lea.vmem %s238_s29, 384  ;;  %s7010_s12 = smov [#allocation2]  }
  0x5c   : > { %p6914_p1 = scmp.ne.s32.totalorder %s238_s29, %s6913_s15  ;;  %s6918_s23 = sshll.u32 %s7010_s12, 4  ;;  %s6919_s23 = int_to_ptr.vmem [resolvable:$false] %s6918_s23 }
  0x5d   : > { %s6920_s27 = scalar_lea.vmem %s6919_s23, 768  ;;  %p6921_p9 = scmp.lt.s32.totalorder %s238_s29, %s6919_s23 }
  0x5e   : > { %p6916_p8 = pnand %p6914_p1, %p6902_p10  ;;  %p6922_p11 = scmp.lt.s32.totalorder %s6920_s27, %s6913_s15 }
  0x60   : > { %p6917_p5 = pneg %p6916_p8  ;;  %p6923_p13 = por %p6922_p11, %p6921_p9 }
  0x62   : > { %p6924_p3 = pnand %p6923_p13, %p6917_p5 }
  0x64   : > { %6927 = shalt.err (!%p6924_p3)
}
  0x65   : > { %5923 = dma.hbm_to_vmem [thread:$0]  (!%p7159_p7), %s7166_s26, 384, %s238_s29, %s226_s6  }
  0x66   : > { %p7437_p12 = scmp.ne.s32.totalorder %s7431_s25, 0 }
  0x67   : > { %s7185_s7 = sand.u32 (!%p7437_p12), 1, %s6992_s19   ;;  %p7438_p1 = scmp.ne.s32.totalorder (!%p7437_p12), %s7433_s11, 0 }
  0x68   : > { %246 = sbr.rel (%p7437_p12) target bundleno = 918 (0x396), region = 40  ;;  %s249_s8 = scalar_lea.sflag (!%p7437_p12), [#allocation3], %s7185_s7 }
  0x69   : > { %s5885_s30 = smul.u32 (!%p7437_p12), 24, %s7185_s7 }
  0x6b   : > { %s7191_s9 = scalar_lea.vmem (!%p7437_p12), [#allocation2], %s5885_s30 }
  0x6d   : > { %6971 = dma.done.wait (%p7438_p1), %s249_s8, 384  }
  0x6e   : > { %6973 = vsyncadd (%p7438_p1), %s249_s8, 4294966912  ;;  %p7439_p3 = scmp.eq.s32.totalorder %s7064_s24, 0 }
  0x70   : > { %6975 = dma.done.wait (%p7439_p3), [#allocation6], 37056   ;;  %p7440_p4 = pmov %p7439_p3 }
  0x71   : > { %p7441_p13 = pmov %p7439_p3 }
  0x72   : > { %6977 = vsyncadd (%p7440_p4), [#allocation6], 4294930240 }
  0x73   : > { %6979 = dma.done.wait (%p7441_p13), [#allocation9], 36912   ;;  %p7442_p5 = pmov %p7439_p3 }
  0x74   : > { %v7011_v0 = vmov 0   ;;  %v5979_v1 = vld [vmem:[#allocation5 + $0x2a4] ss:$48 sps:$4 sm:$0xff]   ;;  %v5983_v3 = vld [vmem:[#allocation5 + $0x2a0] ss:$48 sps:$4 sm:$0xff]   ;;  %s7372_s25 = scalar_lea.vmem [#allocation11], %s5885_s30 }
  0x75   : > { %6981 = vsyncadd (%p7442_p5), [#allocation9], 4294930384  ;;  %2167 = vmatprep.mubr.bf16.mxu1 %v7011_v0  ;;  %v5981_v2 = vld [vmem:[#allocation5 + $0x8a4] ss:$48 sps:$4 sm:$0xff]   ;;  %2094 = vmatprep.subr.bf16.mxu0 %v5979_v1  ;;  %v5984_v4 = vld [vmem:[#allocation5 + $0x8a0] ss:$48 sps:$4 sm:$0xff]  }
  0x76   : > { %2135 = vmatprep.subr.bf16.mxu1 %v5981_v2  ;;  %v5985_v5 = vld [vmem:[#allocation5 + $0x244] ss:$48 sps:$4 sm:$0xff]   ;;  %2095 = vmatpush1.bf16.msra.mxu0 %v5983_v3  ;;  %v5989_v7 = vld [vmem:[#allocation5 + $0x240] ss:$48 sps:$4 sm:$0xff]   ;;  %v6031_v35 = vld [vmem:[#allocation5 + $0x2ac] ss:$48 sps:$4 sm:$0xff]  }
  0x77   : > { %2136 = vmatpush1.bf16.msra.mxu1 %v5984_v4  ;;  %v5987_v6 = vld [vmem:[#allocation5 + $0x844] ss:$48 sps:$4 sm:$0xff]   ;;  %2096 = vmatprep.subr.bf16.mxu0 %v5985_v5  ;;  %v5990_v8 = vld [vmem:[#allocation5 + $0x840] ss:$48 sps:$4 sm:$0xff]   ;;  %v6029_v37 = vld [vmem:[#allocation5 + $0x2a8] ss:$48 sps:$4 sm:$0xff]  }
  0x78   : > { %2137 = vmatprep.subr.bf16.mxu1 %v5987_v6  ;;  %v5991_v9 = vld [vmem:[#allocation5 + $0x1e4] ss:$48 sps:$4 sm:$0xff]   ;;  %v5995_v11 = vld [vmem:[#allocation5 + $0x1e0] ss:$48 sps:$4 sm:$0xff]   ;;  %v6037_v40 = vld [vmem:[#allocation5 + $0x24c] ss:$48 sps:$4 sm:$0xff]  }
  0x79   : > { %v5993_v10 = vld [vmem:[#allocation5 + $0x7e4] ss:$48 sps:$4 sm:$0xff]   ;;  %v5996_v12 = vld [vmem:[#allocation5 + $0x7e0] ss:$48 sps:$4 sm:$0xff]   ;;  %v6035_v41 = vld [vmem:[#allocation5 + $0x248] ss:$48 sps:$4 sm:$0xff]  }
  0x7a   : > { %2097 = vmatpush1.bf16.msra.mxu0 %v5989_v7  ;;  %v5997_v13 = vld [vmem:[#allocation5 + $0x184] ss:$48 sps:$4 sm:$0xff]   ;;  %v6001_v15 = vld [vmem:[#allocation5 + $0x180] ss:$48 sps:$4 sm:$0xff]   ;;  %v6043_v44 = vld [vmem:[#allocation5 + $0x1ec] ss:$48 sps:$4 sm:$0xff]  }
  0x7b   : > { %2138 = vmatpush1.bf16.msra.mxu1 %v5990_v8  ;;  %2098 = vmatprep.subr.bf16.mxu0 %v5991_v9  ;;  %v5999_v14 = vld [vmem:[#allocation5 + $0x784] ss:$48 sps:$4 sm:$0xff]   ;;  %v6002_v16 = vld [vmem:[#allocation5 + $0x780] ss:$48 sps:$4 sm:$0xff]   ;;  %v6041_v45 = vld [vmem:[#allocation5 + $0x1e8] ss:$48 sps:$4 sm:$0xff]  }
  0x7c   : > { %2139 = vmatprep.subr.bf16.mxu1 %v5993_v10  ;;  %v6003_v17 = vld [vmem:[#allocation5 + $0x124] ss:$48 sps:$4 sm:$0xff]   ;;  %v6007_v19 = vld [vmem:[#allocation5 + $0x120] ss:$48 sps:$4 sm:$0xff]   ;;  %v6049_v48 = vld [vmem:[#allocation5 + $0x18c] ss:$48 sps:$4 sm:$0xff]  }
  0x7d   : > { %v6005_v18 = vld [vmem:[#allocation5 + $0x724] ss:$48 sps:$4 sm:$0xff]   ;;  %v6008_v20 = vld [vmem:[#allocation5 + $0x720] ss:$48 sps:$4 sm:$0xff]   ;;  %v6047_v49 = vld [vmem:[#allocation5 + $0x188] ss:$48 sps:$4 sm:$0xff]  }
  0x7e   : > { %2099 = vmatpush1.bf16.msra.mxu0 %v5995_v11  ;;  %v6009_v21 = vld [vmem:[#allocation5 + $0xc4] ss:$48 sps:$4 sm:$0xff]   ;;  %v6013_v23 = vld [vmem:[#allocation5 + $0xc0] ss:$48 sps:$4 sm:$0xff]   ;;  %v6055_v54 = vld [vmem:[#allocation5 + $0x12c] ss:$48 sps:$4 sm:$0xff]  }
  0x7f   : > { %2140 = vmatpush1.bf16.msra.mxu1 %v5996_v12  ;;  %2100 = vmatprep.subr.bf16.mxu0 %v5997_v13  ;;  %v6011_v22 = vld [vmem:[#allocation5 + $0x6c4] ss:$48 sps:$4 sm:$0xff]   ;;  %v6014_v24 = vld [vmem:[#allocation5 + $0x6c0] ss:$48 sps:$4 sm:$0xff]   ;;  %v6053_v55 = vld [vmem:[#allocation5 + $0x128] ss:$48 sps:$4 sm:$0xff]  }
  0x80   : > { %2141 = vmatprep.subr.bf16.mxu1 %v5999_v14  ;;  %v6015_v25 = vld [vmem:[#allocation5 + $0x64] ss:$48 sps:$4 sm:$0xff]   ;;  %v6019_v27 = vld [vmem:[#allocation5 + $0x60] ss:$48 sps:$4 sm:$0xff]   ;;  %v6061_v58 = vld [vmem:[#allocation5 + $0xcc] ss:$48 sps:$4 sm:$0xff]  }
  0x81   : > { %v6017_v26 = vld [vmem:[#allocation5 + $0x664] ss:$48 sps:$4 sm:$0xff]   ;;  %v6020_v28 = vld [vmem:[#allocation5 + $0x660] ss:$48 sps:$4 sm:$0xff]   ;;  %v6059_v59 = vld [vmem:[#allocation5 + $0xc8] ss:$48 sps:$4 sm:$0xff]  }
  0x82   : > { %2101 = vmatpush1.bf16.msra.mxu0 %v6001_v15  ;;  %v6021_v29 = vld [vmem:[#allocation5 + $0x4] ss:$48 sps:$4 sm:$0xff]   ;;  %v6025_v31 = vld [vmem:[#allocation5] ss:$48 sps:$4 sm:$0xff]   ;;  %v6067_v62 = vld [vmem:[#allocation5 + $0x6c] ss:$48 sps:$4 sm:$0xff]  }
  0x83   : > { %2142 = vmatpush1.bf16.msra.mxu1 %v6002_v16  ;;  %2102 = vmatprep.subr.bf16.mxu0 %v6003_v17  ;;  %v6023_v30 = vld [vmem:[#allocation5 + $0x604] ss:$48 sps:$4 sm:$0xff]   ;;  %v6026_v32 = vld [vmem:[#allocation5 + $0x600] ss:$48 sps:$4 sm:$0xff]   ;;  %v6065_v63 = vld [vmem:[#allocation5 + $0x68] ss:$48 sps:$4 sm:$0xff]  }
  0x84   : > { %2143 = vmatprep.subr.bf16.mxu1 %v6005_v18  ;;  %v298_v33 = vld [vmem:[%s7191_s9 + $0x10] sm:$0xff]  ;;  %v297_v50 = vld [vmem:[%s7191_s9 + $0x8] sm:$0xff]  ;;  %v296_v6 = vld [vmem:[%s7191_s9] sm:$0xff]  ;;  %s5886_s11 = smul.u32 384, %s7064_s24  ;;  %s5051_s17 = sshll.u32 %s7372_s25, 4  ;;  %s5052_s17 = int_to_ptr.vmem [resolvable:$true] %s5051_s17 }
  0x85   : > { %v6027_v34 = vld [vmem:[#allocation5 + $0x5a4] ss:$48 sps:$4 sm:$0xff]   ;;  %v7207_v36 = vpack.c.bf16 %v298_v33, %v298_v33  ;;  %v6032_v38 = vld [vmem:[#allocation5 + $0x5a0] ss:$48 sps:$4 sm:$0xff]   ;;  %v7211_v53 = vpack.c.bf16 %v297_v50, %v297_v50  ;;  %v6073_v3 = vld [vmem:[#allocation5 + $0xc] ss:$48 sps:$4 sm:$0xff]   ;;  %v7216_v9 = vpack.c.bf16 %v296_v6, %v296_v6 }
  0x86   : > { %2103 = vmatpush1.bf16.msra.mxu0 %v6007_v19  ;;  %v6033_v39 = vld [vmem:[#allocation5 + $0x544] ss:$48 sps:$4 sm:$0xff]   ;;  %v6038_v42 = vld [vmem:[#allocation5 + $0x540] ss:$48 sps:$4 sm:$0xff]   ;;  %v6071_v4 = vld [vmem:[#allocation5 + $0x8] ss:$48 sps:$4 sm:$0xff]   ;;  %s7383_s6 = scalar_lea.hbm %s7426_s5, %s5886_s11 }
  0x87   : > { %2144 = vmatpush1.bf16.msra.mxu1 %v6008_v20  ;;  %2104 = vmatprep.subr.bf16.mxu0 %v6009_v21  ;;  %v6039_v43 = vld [vmem:[#allocation5 + $0x4e4] ss:$48 sps:$4 sm:$0xff]   ;;  %v6044_v46 = vld [vmem:[#allocation5 + $0x4e0] ss:$48 sps:$4 sm:$0xff]   ;;  %v6077_v7 = vld [vmem:[#allocation5 + $0x5ac] ss:$48 sps:$4 sm:$0xff]  }
  0x88   : > { %2145 = vmatprep.subr.bf16.mxu1 %v6011_v22  ;;  %v6045_v47 = vld [vmem:[#allocation5 + $0x484] ss:$48 sps:$4 sm:$0xff]   ;;  %v6050_v51 = vld [vmem:[#allocation5 + $0x480] ss:$48 sps:$4 sm:$0xff]   ;;  %2126 = vmatprep.mubr.bf16.mxu0 %v7211_v53  ;;  %v6080_v8 = vld [vmem:[#allocation5 + $0x8ac] ss:$48 sps:$4 sm:$0xff]  }
  0x89   : > { %v6051_v52 = vld [vmem:[#allocation5 + $0x424] ss:$48 sps:$4 sm:$0xff]   ;;  %v6056_v56 = vld [vmem:[#allocation5 + $0x420] ss:$48 sps:$4 sm:$0xff]   ;;  %v6075_v10 = vld [vmem:[#allocation5 + $0x5a8] ss:$48 sps:$4 sm:$0xff]  }
  0x8a   : > { %2105 = vmatpush1.bf16.msra.mxu0 %v6013_v23  ;;  %v6057_v57 = vld [vmem:[#allocation5 + $0x3c4] ss:$48 sps:$4 sm:$0xff]   ;;  %v6062_v60 = vld [vmem:[#allocation5 + $0x3c0] ss:$48 sps:$4 sm:$0xff]   ;;  %v6078_v11 = vld [vmem:[#allocation5 + $0x8a8] ss:$48 sps:$4 sm:$0xff]  }
  0x8b   : > { %2146 = vmatpush1.bf16.msra.mxu1 %v6014_v24  ;;  %2106 = vmatprep.subr.bf16.mxu0 %v6015_v25  ;;  %v6063_v61 = vld [vmem:[#allocation5 + $0x364] ss:$48 sps:$4 sm:$0xff]   ;;  %v6068_v1 = vld [vmem:[#allocation5 + $0x360] ss:$48 sps:$4 sm:$0xff]   ;;  %v6083_v12 = vld [vmem:[#allocation5 + $0x54c] ss:$48 sps:$4 sm:$0xff]  }
  0x8c   : > { %2147 = vmatprep.subr.bf16.mxu1 %v6017_v26  ;;  %v6069_v2 = vld [vmem:[#allocation5 + $0x304] ss:$48 sps:$4 sm:$0xff]   ;;  %v6074_v5 = vld [vmem:[#allocation5 + $0x300] ss:$48 sps:$4 sm:$0xff]   ;;  %v6086_v13 = vld [vmem:[#allocation5 + $0x84c] ss:$48 sps:$4 sm:$0xff]  }
  0x8d   : > { %v6081_v14 = vld [vmem:[#allocation5 + $0x548] ss:$48 sps:$4 sm:$0xff]   ;;  %v6089_v16 = vld [vmem:[#allocation5 + $0x4ec] ss:$48 sps:$4 sm:$0xff]   ;;  %v6140_v50 = vld [vmem:[#allocation5 + $0x7f4] ss:$48 sps:$4 sm:$0xff]  }
  0x8e   : > { %2107 = vmatpush1.bf16.msra.mxu0 %v6019_v27  ;;  %v6084_v15 = vld [vmem:[#allocation5 + $0x848] ss:$48 sps:$4 sm:$0xff]   ;;  %v6092_v17 = vld [vmem:[#allocation5 + $0x7ec] ss:$48 sps:$4 sm:$0xff]   ;;  %v6162_v6 = vld [vmem:[#allocation5 + $0x670] ss:$48 sps:$4 sm:$0xff]  }
  0x8f   : > { %2148 = vmatpush1.bf16.msra.mxu1 %v6020_v28  ;;  %2108 = vmatprep.subr.bf16.mxu0 %v6021_v29  ;;  %v6087_v18 = vld [vmem:[#allocation5 + $0x4e8] ss:$48 sps:$4 sm:$0xff]   ;;  %v6095_v20 = vld [vmem:[#allocation5 + $0x48c] ss:$48 sps:$4 sm:$0xff]   ;;  %s5037_s22 = scalar_lea.sflag [#allocation4], %s7185_s7  ;;  %s6928_s16 = scalar_lea.vmem %s5052_s17, 384 }
  0x90   : > { %2149 = vmatprep.subr.bf16.mxu1 %v6023_v30  ;;  %v6090_v19 = vld [vmem:[#allocation5 + $0x7e8] ss:$48 sps:$4 sm:$0xff]   ;;  %v6098_v21 = vld [vmem:[#allocation5 + $0x78c] ss:$48 sps:$4 sm:$0xff]   ;;  %p6929_p8 = scmp.ne.s32.totalorder %s5052_s17, %s6928_s16  ;;  %p7443_p7 = scmp.ne.s32.totalorder %s7434_s13, 0 }
  0x91   : > { %v6093_v22 = vld [vmem:[#allocation5 + $0x488] ss:$48 sps:$4 sm:$0xff]   ;;  %v6101_v24 = vld [vmem:[#allocation5 + $0x42c] ss:$48 sps:$4 sm:$0xff]   ;;  %s7012_s24 = smov [#allocation11]  }
  0x92   : > { %2109 = vmatpush1.bf16.msra.mxu0 %v6025_v31  ;;  %v6096_v23 = vld [vmem:[#allocation5 + $0x788] ss:$48 sps:$4 sm:$0xff]   ;;  %v6104_v25 = vld [vmem:[#allocation5 + $0x72c] ss:$48 sps:$4 sm:$0xff]   ;;  %p6930_p10 = pnand %p6929_p8, %p7443_p7  ;;  %s6932_s15 = sshll.u32 %s7012_s24, 4  ;;  %s6933_s15 = int_to_ptr.vmem [resolvable:$false] %s6932_s15 }
  0x93   : > { %2150 = vmatpush1.bf16.msra.mxu1 %v6026_v32  ;;  %2110 = vmatprep.subr.bf16.mxu0 %v6027_v34  ;;  %v6099_v26 = vld [vmem:[#allocation5 + $0x428] ss:$48 sps:$4 sm:$0xff]   ;;  %v6107_v28 = vld [vmem:[#allocation5 + $0x3cc] ss:$48 sps:$4 sm:$0xff]   ;;  %s6934_s12 = scalar_lea.vmem %s6933_s15, 768  ;;  %p6935_p0 = scmp.lt.s32.totalorder %s5052_s17, %s6933_s15 }
  0x94   : > { %2176 = vmatprep.subr.bf16.mxu1 %v6031_v35  ;;  %v6102_v27 = vld [vmem:[#allocation5 + $0x728] ss:$48 sps:$4 sm:$0xff]   ;;  %v6110_v29 = vld [vmem:[#allocation5 + $0x6cc] ss:$48 sps:$4 sm:$0xff]   ;;  %p6931_p6 = pneg %p6930_p10  ;;  %p6936_p2 = scmp.lt.s32.totalorder %s6934_s12, %s6928_s16 }
  0x95   : > { %v6105_v30 = vld [vmem:[#allocation5 + $0x3c8] ss:$48 sps:$4 sm:$0xff]   ;;  %v6113_v32 = vld [vmem:[#allocation5 + $0x36c] ss:$48 sps:$4 sm:$0xff]  }
  0x96   : > { %2168 = vmatmul.mubr.bf16.vlgmr.msra.gmra.mxu1 %v7207_v36  ;;  %2111 = vmatpush2.bf16.msra.mxu0 %v6032_v38  ;;  %v6108_v31 = vld [vmem:[#allocation5 + $0x6c8] ss:$48 sps:$4 sm:$0xff]   ;;  %v6116_v33 = vld [vmem:[#allocation5 + $0x66c] ss:$48 sps:$4 sm:$0xff]   ;;  %p6937_p9 = por %p6936_p2, %p6935_p0 }
  0x97   : > { %2177 = vmatpush1.bf16.msra.mxu1 %v6029_v37  ;;  %2112 = vmatprep.subr.bf16.mxu0 %v6033_v39  ;;  %v6111_v34 = vld [vmem:[#allocation5 + $0x368] ss:$48 sps:$4 sm:$0xff]   ;;  %v6119_v37 = vld [vmem:[#allocation5 + $0x30c] ss:$48 sps:$4 sm:$0xff]  }
  0x98   : > { %2178 = vmatprep.subr.bf16.mxu1 %v6037_v40  ;;  %2208 = vmatprep.mubr.bf16.mxu1 %v7211_v53  ;;  %v6114_v35 = vld [vmem:[#allocation5 + $0x668] ss:$48 sps:$4 sm:$0xff]   ;;  %v6122_v38 = vld [vmem:[#allocation5 + $0x60c] ss:$48 sps:$4 sm:$0xff]   ;;  %p6938_p11 = pnand %p6937_p9, %p6931_p6 }
  0x99   : > { %v6117_v39 = vld [vmem:[#allocation5 + $0x308] ss:$48 sps:$4 sm:$0xff]  }
  0x9a   : > { %2113 = vmatpush2.bf16.msra.mxu0 %v6038_v42  ;;  %v6120_v40 = vld [vmem:[#allocation5 + $0x608] ss:$48 sps:$4 sm:$0xff]   ;;  %v6128_v42 = vld [vmem:[#allocation5 + $0x8b4] ss:$48 sps:$4 sm:$0xff]  }
  0x9b   : > { %2179 = vmatpush1.bf16.msra.mxu1 %v6035_v41  ;;  %2114 = vmatprep.subr.bf16.mxu0 %v6039_v43  ;;  %v6125_v41 = vld [vmem:[#allocation5 + $0x2b4] ss:$48 sps:$4 sm:$0xff]   ;;  %v6123_v43 = vld [vmem:[#allocation5 + $0x2b0] ss:$48 sps:$4 sm:$0xff]  }
  0x9c   : > { %2180 = vmatprep.subr.bf16.mxu1 %v6043_v44  ;;  %v6126_v44 = vld [vmem:[#allocation5 + $0x8b0] ss:$48 sps:$4 sm:$0xff]  }
  0x9e   : > { %2115 = vmatpush2.bf16.msra.mxu0 %v6044_v46  ;;  %v6134_v46 = vld [vmem:[#allocation5 + $0x854] ss:$48 sps:$4 sm:$0xff]  }
  0x9f   : > { %2181 = vmatpush1.bf16.msra.mxu1 %v6041_v45  ;;  %2116 = vmatprep.subr.bf16.mxu0 %v6045_v47  ;;  %v6131_v45 = vld [vmem:[#allocation5 + $0x254] ss:$48 sps:$4 sm:$0xff]   ;;  %v6129_v47 = vld [vmem:[#allocation5 + $0x250] ss:$48 sps:$4 sm:$0xff]  }
  0xa0   : > { %2182 = vmatprep.subr.bf16.mxu1 %v6049_v48  ;;  %v6132_v48 = vld [vmem:[#allocation5 + $0x850] ss:$48 sps:$4 sm:$0xff]  }
  0xa2   : > { %2117 = vmatpush2.bf16.msra.mxu0 %v6050_v51  ;;  %v6135_v51 = vld [vmem:[#allocation5 + $0x1f0] ss:$48 sps:$4 sm:$0xff]  }
  0xa3   : > { %2183 = vmatpush1.bf16.msra.mxu1 %v6047_v49  ;;  %2118 = vmatprep.subr.bf16.mxu0 %v6051_v52  ;;  %v6137_v49 = vld [vmem:[#allocation5 + $0x1f4] ss:$48 sps:$4 sm:$0xff]   ;;  %v6138_v52 = vld [vmem:[#allocation5 + $0x7f0] ss:$48 sps:$4 sm:$0xff]  }
  0xa4   : > { %2184 = vmatprep.subr.bf16.mxu1 %v6055_v54  ;;  %v6143_v54 = vld [vmem:[#allocation5 + $0x194] ss:$48 sps:$4 sm:$0xff]  }
  0xa6   : > { %2119 = vmatpush2.bf16.msra.mxu0 %v6056_v56  ;;  %v6141_v56 = vld [vmem:[#allocation5 + $0x190] ss:$48 sps:$4 sm:$0xff]  }
  0xa7   : > { %2185 = vmatpush1.bf16.msra.mxu1 %v6053_v55  ;;  %2120 = vmatprep.subr.bf16.mxu0 %v6057_v57  ;;  %v6146_v55 = vld [vmem:[#allocation5 + $0x794] ss:$48 sps:$4 sm:$0xff]   ;;  %v6144_v57 = vld [vmem:[#allocation5 + $0x790] ss:$48 sps:$4 sm:$0xff]  }
  0xa8   : > { %2186 = vmatprep.subr.bf16.mxu1 %v6061_v58  ;;  %v6149_v58 = vld [vmem:[#allocation5 + $0x134] ss:$48 sps:$4 sm:$0xff]  }
  0xaa   : > { %2121 = vmatpush2.bf16.msra.mxu0 %v6062_v60  ;;  %v6147_v60 = vld [vmem:[#allocation5 + $0x130] ss:$48 sps:$4 sm:$0xff]  }
  0xab   : > { %2187 = vmatpush1.bf16.msra.mxu1 %v6059_v59  ;;  %2122 = vmatprep.subr.bf16.mxu0 %v6063_v61  ;;  %v6152_v59 = vld [vmem:[#allocation5 + $0x734] ss:$48 sps:$4 sm:$0xff]   ;;  %v6150_v61 = vld [vmem:[#allocation5 + $0x730] ss:$48 sps:$4 sm:$0xff]  }
  0xac   : > { %2188 = vmatprep.subr.bf16.mxu1 %v6067_v62  ;;  %v6155_v62 = vld [vmem:[#allocation5 + $0xd4] ss:$48 sps:$4 sm:$0xff]  }
  0xae   : > { %2123 = vmatpush2.bf16.msra.mxu0 %v6068_v1  ;;  %v6153_v1 = vld [vmem:[#allocation5 + $0xd0] ss:$48 sps:$4 sm:$0xff]  }
  0xaf   : > { %2189 = vmatpush1.bf16.msra.mxu1 %v6065_v63  ;;  %2124 = vmatprep.subr.bf16.mxu0 %v6069_v2  ;;  %v6158_v63 = vld [vmem:[#allocation5 + $0x6d4] ss:$48 sps:$4 sm:$0xff]   ;;  %v6156_v2 = vld [vmem:[#allocation5 + $0x6d0] ss:$48 sps:$4 sm:$0xff]  }
  0xb0   : > { %2190 = vmatprep.subr.bf16.mxu1 %v6073_v3  ;;  %v6161_v3 = vld [vmem:[#allocation5 + $0x74] ss:$48 sps:$4 sm:$0xff]  }
  0xb2   : > { %2125 = vmatpush2.bf16.msra.mxu0 %v6074_v5  ;;  %v6159_v5 = vld [vmem:[#allocation5 + $0x70] ss:$48 sps:$4 sm:$0xff]  }
  0xb3   : > { %2191 = vmatpush1.bf16.msra.mxu1 %v6071_v4  ;;  %2217 = vmatprep.subr.bf16.mxu0 %v6080_v8  ;;  %v6164_v4 = vld [vmem:[#allocation5 + $0x674] ss:$48 sps:$4 sm:$0xff]  }
  0xb4   : > { %2192 = vmatprep.subr.bf16.mxu1 %v6077_v7  ;;  %v6167_v7 = vld [vmem:[#allocation5 + $0x14] ss:$48 sps:$4 sm:$0xff]  }
  0xb5   : > { %2127 = vmatmul.mubr.bf16.vlgmr.msra.gmra.mxu0 %v7216_v9  ;;  %v6170_v8 = vld [vmem:[#allocation5 + $0x614] ss:$48 sps:$4 sm:$0xff]  }
  0xb6   : > { %2218 = vmatpush1.bf16.msra.mxu0 %v6078_v11  ;;  %2249 = vmatprep.mubr.bf16.mxu0 %v7011_v0  ;;  %v6168_v11 = vld [vmem:[#allocation5 + $0x610] ss:$48 sps:$4 sm:$0xff]  }
  0xb7   : > { %2193 = vmatpush2.bf16.msra.mxu1 %v6075_v10  ;;  %2219 = vmatprep.subr.bf16.mxu0 %v6086_v13  ;;  %v6165_v10 = vld [vmem:[#allocation5 + $0x10] ss:$48 sps:$4 sm:$0xff]   ;;  %v6176_v13 = vld [vmem:[#allocation5 + $0x2bc] ss:$48 sps:$4 sm:$0xff]  }
  0xb8   : > { %2194 = vmatprep.subr.bf16.mxu1 %v6083_v12  ;;  %v6173_v12 = vld [vmem:[#allocation5 + $0x5b4] ss:$48 sps:$4 sm:$0xff]  }
  0xba   : > { %2220 = vmatpush1.bf16.msra.mxu0 %v6084_v15  ;;  %v6174_v15 = vld [vmem:[#allocation5 + $0x2b8] ss:$48 sps:$4 sm:$0xff]  }
  0xbb   : > { %2195 = vmatpush2.bf16.msra.mxu1 %v6081_v14  ;;  %2221 = vmatprep.subr.bf16.mxu0 %v6092_v17  ;;  %v6171_v14 = vld [vmem:[#allocation5 + $0x5b0] ss:$48 sps:$4 sm:$0xff]   ;;  %v6182_v17 = vld [vmem:[#allocation5 + $0x25c] ss:$48 sps:$4 sm:$0xff]  }
  0xbc   : > { %2196 = vmatprep.subr.bf16.mxu1 %v6089_v16  ;;  %v6179_v16 = vld [vmem:[#allocation5 + $0x554] ss:$48 sps:$4 sm:$0xff]  }
  0xbe   : > { %2222 = vmatpush1.bf16.msra.mxu0 %v6090_v19  ;;  %v6180_v19 = vld [vmem:[#allocation5 + $0x258] ss:$48 sps:$4 sm:$0xff]  }
  0xbf   : > { %2197 = vmatpush2.bf16.msra.mxu1 %v6087_v18  ;;  %2223 = vmatprep.subr.bf16.mxu0 %v6098_v21  ;;  %v6177_v18 = vld [vmem:[#allocation5 + $0x550] ss:$48 sps:$4 sm:$0xff]   ;;  %v6188_v21 = vld [vmem:[#allocation5 + $0x1fc] ss:$48 sps:$4 sm:$0xff]  }
  0xc0   : > { %2198 = vmatprep.subr.bf16.mxu1 %v6095_v20  ;;  %v6185_v20 = vld [vmem:[#allocation5 + $0x4f4] ss:$48 sps:$4 sm:$0xff]  }
  0xc2   : > { %2224 = vmatpush1.bf16.msra.mxu0 %v6096_v23  ;;  %v6186_v23 = vld [vmem:[#allocation5 + $0x1f8] ss:$48 sps:$4 sm:$0xff]  }
  0xc3   : > { %2199 = vmatpush2.bf16.msra.mxu1 %v6093_v22  ;;  %2225 = vmatprep.subr.bf16.mxu0 %v6104_v25  ;;  %v6183_v22 = vld [vmem:[#allocation5 + $0x4f0] ss:$48 sps:$4 sm:$0xff]   ;;  %v6194_v25 = vld [vmem:[#allocation5 + $0x19c] ss:$48 sps:$4 sm:$0xff]  }
  0xc4   : > { %2200 = vmatprep.subr.bf16.mxu1 %v6101_v24  ;;  %v6191_v24 = vld [vmem:[#allocation5 + $0x494] ss:$48 sps:$4 sm:$0xff]  }
  0xc6   : > { %2226 = vmatpush1.bf16.msra.mxu0 %v6102_v27  ;;  %v6192_v27 = vld [vmem:[#allocation5 + $0x198] ss:$48 sps:$4 sm:$0xff]  }
  0xc7   : > { %2201 = vmatpush2.bf16.msra.mxu1 %v6099_v26  ;;  %2227 = vmatprep.subr.bf16.mxu0 %v6110_v29  ;;  %v6189_v26 = vld [vmem:[#allocation5 + $0x490] ss:$48 sps:$4 sm:$0xff]   ;;  %v6200_v29 = vld [vmem:[#allocation5 + $0x13c] ss:$48 sps:$4 sm:$0xff]  }
  0xc8   : > { %2202 = vmatprep.subr.bf16.mxu1 %v6107_v28  ;;  %v6197_v28 = vld [vmem:[#allocation5 + $0x434] ss:$48 sps:$4 sm:$0xff]  }
  0xca   : > { %2228 = vmatpush1.bf16.msra.mxu0 %v6108_v31  ;;  %v6198_v31 = vld [vmem:[#allocation5 + $0x138] ss:$48 sps:$4 sm:$0xff]  }
  0xcb   : > { %2203 = vmatpush2.bf16.msra.mxu1 %v6105_v30  ;;  %2229 = vmatprep.subr.bf16.mxu0 %v6116_v33  ;;  %v6195_v30 = vld [vmem:[#allocation5 + $0x430] ss:$48 sps:$4 sm:$0xff]   ;;  %v6206_v33 = vld [vmem:[#allocation5 + $0xdc] ss:$48 sps:$4 sm:$0xff]  }
  0xcc   : > { %2204 = vmatprep.subr.bf16.mxu1 %v6113_v32  ;;  %v6203_v32 = vld [vmem:[#allocation5 + $0x3d4] ss:$48 sps:$4 sm:$0xff]  }
  0xce   : > { %2230 = vmatpush1.bf16.msra.mxu0 %v6114_v35  ;;  %v6204_v35 = vld [vmem:[#allocation5 + $0xd8] ss:$48 sps:$4 sm:$0xff]  }
  0xcf   : > { %2205 = vmatpush2.bf16.msra.mxu1 %v6111_v34  ;;  %2231 = vmatprep.subr.bf16.mxu0 %v6122_v38  ;;  %v6201_v34 = vld [vmem:[#allocation5 + $0x3d0] ss:$48 sps:$4 sm:$0xff]   ;;  %v6212_v38 = vld [vmem:[#allocation5 + $0x7c] ss:$48 sps:$4 sm:$0xff]  }
  0xd0   : > { %2206 = vmatprep.subr.bf16.mxu1 %v6119_v37  ;;  %v6209_v37 = vld [vmem:[#allocation5 + $0x374] ss:$48 sps:$4 sm:$0xff]  }
  0xd2   : > { %2232 = vmatpush1.bf16.msra.mxu0 %v6120_v40  ;;  %v6210_v40 = vld [vmem:[#allocation5 + $0x78] ss:$48 sps:$4 sm:$0xff]  }
  0xd3   : > { %2207 = vmatpush2.bf16.msra.mxu1 %v6117_v39  ;;  %2258 = vmatprep.subr.bf16.mxu0 %v6125_v41  ;;  %v6207_v39 = vld [vmem:[#allocation5 + $0x370] ss:$48 sps:$4 sm:$0xff]   ;;  %v6215_v41 = vld [vmem:[#allocation5 + $0x314] ss:$48 sps:$4 sm:$0xff]  }
  0xd4   : > { %2299 = vmatprep.subr.bf16.mxu1 %v6128_v42  ;;  %v6218_v42 = vld [vmem:[#allocation5 + $0x1c] ss:$48 sps:$4 sm:$0xff]  }
  0xd5   : > { %2250 = vmatmul.mubr.bf16.vlgmr.msra.gmra.mxu0 %v7207_v36 }
  0xd6   : > { %2209 = vmatmul.mubr.bf16.vlgmr.msra.gmra.mxu1 %v7216_v9  ;;  %2259 = vmatpush1.bf16.msra.mxu0 %v6123_v43  ;;  %v6213_v43 = vld [vmem:[#allocation5 + $0x310] ss:$48 sps:$4 sm:$0xff]  }
  0xd7   : > { %2300 = vmatpush1.bf16.msra.mxu1 %v6126_v44  ;;  %2260 = vmatprep.subr.bf16.mxu0 %v6131_v45  ;;  %v6216_v44 = vld [vmem:[#allocation5 + $0x18] ss:$48 sps:$4 sm:$0xff]   ;;  %v6221_v45 = vld [vmem:[#allocation5 + $0x5bc] ss:$48 sps:$4 sm:$0xff]  }
  0xd8   : > { %2301 = vmatprep.subr.bf16.mxu1 %v6134_v46  ;;  %2331 = vmatprep.mubr.bf16.mxu1 %v7011_v0  ;;  %v6224_v46 = vld [vmem:[#allocation5 + $0x8bc] ss:$48 sps:$4 sm:$0xff]  }
  0xd9   : > { %2290 = vmatprep.mubr.bf16.mxu0 %v7211_v53 }
  0xda   : > { %2261 = vmatpush1.bf16.msra.mxu0 %v6129_v47  ;;  %v6219_v47 = vld [vmem:[#allocation5 + $0x5b8] ss:$48 sps:$4 sm:$0xff]  }
  0xdb   : > { %2302 = vmatpush1.bf16.msra.mxu1 %v6132_v48  ;;  %2262 = vmatprep.subr.bf16.mxu0 %v6137_v49  ;;  %v6222_v48 = vld [vmem:[#allocation5 + $0x8b8] ss:$48 sps:$4 sm:$0xff]   ;;  %v6227_v49 = vld [vmem:[#allocation5 + $0x55c] ss:$48 sps:$4 sm:$0xff]  }
  0xdc   : > { %2303 = vmatprep.subr.bf16.mxu1 %v6140_v50  ;;  %v6230_v50 = vld [vmem:[#allocation5 + $0x85c] ss:$48 sps:$4 sm:$0xff]  }
  0xde   : > { %2263 = vmatpush1.bf16.msra.mxu0 %v6135_v51  ;;  %v6225_v51 = vld [vmem:[#allocation5 + $0x558] ss:$48 sps:$4 sm:$0xff]  }
  0xdf   : > { %2304 = vmatpush1.bf16.msra.mxu1 %v6138_v52  ;;  %2264 = vmatprep.subr.bf16.mxu0 %v6143_v54  ;;  %v6228_v52 = vld [vmem:[#allocation5 + $0x858] ss:$48 sps:$4 sm:$0xff]   ;;  %v6233_v54 = vld [vmem:[#allocation5 + $0x4fc] ss:$48 sps:$4 sm:$0xff]  }
  0xe0   : > { %2305 = vmatprep.subr.bf16.mxu1 %v6146_v55  ;;  %v6236_v55 = vld [vmem:[#allocation5 + $0x7fc] ss:$48 sps:$4 sm:$0xff]  }
  0xe2   : > { %2265 = vmatpush1.bf16.msra.mxu0 %v6141_v56  ;;  %v6231_v56 = vld [vmem:[#allocation5 + $0x4f8] ss:$48 sps:$4 sm:$0xff]  }
  0xe3   : > { %2306 = vmatpush1.bf16.msra.mxu1 %v6144_v57  ;;  %2266 = vmatprep.subr.bf16.mxu0 %v6149_v58  ;;  %v6234_v57 = vld [vmem:[#allocation5 + $0x7f8] ss:$48 sps:$4 sm:$0xff]   ;;  %v6239_v58 = vld [vmem:[#allocation5 + $0x49c] ss:$48 sps:$4 sm:$0xff]  }
  0xe4   : > { %2307 = vmatprep.subr.bf16.mxu1 %v6152_v59  ;;  %v6242_v59 = vld [vmem:[#allocation5 + $0x79c] ss:$48 sps:$4 sm:$0xff]  }
  0xe6   : > { %2267 = vmatpush1.bf16.msra.mxu0 %v6147_v60  ;;  %v6237_v60 = vld [vmem:[#allocation5 + $0x498] ss:$48 sps:$4 sm:$0xff]  }
  0xe7   : > { %2308 = vmatpush1.bf16.msra.mxu1 %v6150_v61  ;;  %2268 = vmatprep.subr.bf16.mxu0 %v6155_v62  ;;  %v6240_v61 = vld [vmem:[#allocation5 + $0x798] ss:$48 sps:$4 sm:$0xff]   ;;  %v6245_v62 = vld [vmem:[#allocation5 + $0x43c] ss:$48 sps:$4 sm:$0xff]  }
  0xe8   : > { %2309 = vmatprep.subr.bf16.mxu1 %v6158_v63  ;;  %v6248_v63 = vld [vmem:[#allocation5 + $0x73c] ss:$48 sps:$4 sm:$0xff]  }
  0xea   : > { %2269 = vmatpush1.bf16.msra.mxu0 %v6153_v1  ;;  %v6243_v1 = vld [vmem:[#allocation5 + $0x438] ss:$48 sps:$4 sm:$0xff]  }
  0xeb   : > { %2310 = vmatpush1.bf16.msra.mxu1 %v6156_v2  ;;  %2270 = vmatprep.subr.bf16.mxu0 %v6161_v3  ;;  %v6246_v2 = vld [vmem:[#allocation5 + $0x738] ss:$48 sps:$4 sm:$0xff]   ;;  %v6251_v3 = vld [vmem:[#allocation5 + $0x3dc] ss:$48 sps:$4 sm:$0xff]  }
  0xec   : > { %2311 = vmatprep.subr.bf16.mxu1 %v6164_v4  ;;  %v6254_v4 = vld [vmem:[#allocation5 + $0x6dc] ss:$48 sps:$4 sm:$0xff]  }
  0xee   : > { %2271 = vmatpush1.bf16.msra.mxu0 %v6159_v5  ;;  %v6249_v5 = vld [vmem:[#allocation5 + $0x3d8] ss:$48 sps:$4 sm:$0xff]  }
  0xef   : > { %2312 = vmatpush1.bf16.msra.mxu1 %v6162_v6  ;;  %2272 = vmatprep.subr.bf16.mxu0 %v6167_v7  ;;  %v6252_v6 = vld [vmem:[#allocation5 + $0x6d8] ss:$48 sps:$4 sm:$0xff]   ;;  %v6257_v7 = vld [vmem:[#allocation5 + $0x37c] ss:$48 sps:$4 sm:$0xff]  }
  0xf0   : > { %2313 = vmatprep.subr.bf16.mxu1 %v6170_v8  ;;  %v6260_v8 = vld [vmem:[#allocation5 + $0x67c] ss:$48 sps:$4 sm:$0xff]  }
  0xf2   : > { %2273 = vmatpush1.bf16.msra.mxu0 %v6165_v10  ;;  %v6255_v10 = vld [vmem:[#allocation5 + $0x378] ss:$48 sps:$4 sm:$0xff]  }
  0xf3   : > { %2314 = vmatpush1.bf16.msra.mxu1 %v6168_v11  ;;  %2274 = vmatprep.subr.bf16.mxu0 %v6173_v12  ;;  %v6258_v11 = vld [vmem:[#allocation5 + $0x678] ss:$48 sps:$4 sm:$0xff]   ;;  %v6263_v12 = vld [vmem:[#allocation5 + $0x31c] ss:$48 sps:$4 sm:$0xff]  }
  0xf4   : > { %2340 = vmatprep.subr.bf16.mxu1 %v6176_v13  ;;  %v6266_v13 = vld [vmem:[#allocation5 + $0x61c] ss:$48 sps:$4 sm:$0xff]  }
  0xf6   : > { %2332 = vmatmul.mubr.bf16.vlgmr.msra.gmra.mxu1 %v7207_v36  ;;  %2275 = vmatpush2.bf16.msra.mxu0 %v6171_v14  ;;  %v6261_v14 = vld [vmem:[#allocation5 + $0x318] ss:$48 sps:$4 sm:$0xff]  }
  0xf7   : > { %2341 = vmatpush1.bf16.msra.mxu1 %v6174_v15  ;;  %2276 = vmatprep.subr.bf16.mxu0 %v6179_v16  ;;  %v6264_v15 = vld [vmem:[#allocation5 + $0x618] ss:$48 sps:$4 sm:$0xff]   ;;  %v6269_v16 = vld [vmem:[#allocation5 + $0x2c4] ss:$48 sps:$4 sm:$0xff]  }
  0xf8   : > { %2342 = vmatprep.subr.bf16.mxu1 %v6182_v17  ;;  %2372 = vmatprep.mubr.bf16.mxu1 %v7211_v53  ;;  %v6272_v17 = vld [vmem:[#allocation5 + $0x8c4] ss:$48 sps:$4 sm:$0xff]  }
  0xfa   : > { %2277 = vmatpush2.bf16.msra.mxu0 %v6177_v18  ;;  %v6267_v18 = vld [vmem:[#allocation5 + $0x2c0] ss:$48 sps:$4 sm:$0xff]  }
  0xfb   : > { %2343 = vmatpush1.bf16.msra.mxu1 %v6180_v19  ;;  %2278 = vmatprep.subr.bf16.mxu0 %v6185_v20  ;;  %v6270_v19 = vld [vmem:[#allocation5 + $0x8c0] ss:$48 sps:$4 sm:$0xff]   ;;  %v6275_v20 = vld [vmem:[#allocation5 + $0x264] ss:$48 sps:$4 sm:$0xff]  }
  0xfc   : > { %2344 = vmatprep.subr.bf16.mxu1 %v6188_v21  ;;  %v6278_v21 = vld [vmem:[#allocation5 + $0x864] ss:$48 sps:$4 sm:$0xff]  }
  0xfe   : > { %2279 = vmatpush2.bf16.msra.mxu0 %v6183_v22  ;;  %v6273_v22 = vld [vmem:[#allocation5 + $0x260] ss:$48 sps:$4 sm:$0xff]  }
  0xff   : > { %2345 = vmatpush1.bf16.msra.mxu1 %v6186_v23  ;;  %2280 = vmatprep.subr.bf16.mxu0 %v6191_v24  ;;  %v6276_v23 = vld [vmem:[#allocation5 + $0x860] ss:$48 sps:$4 sm:$0xff]   ;;  %v6281_v24 = vld [vmem:[#allocation5 + $0x204] ss:$48 sps:$4 sm:$0xff]  }
 0x100   : > { %2346 = vmatprep.subr.bf16.mxu1 %v6194_v25  ;;  %v6284_v25 = vld [vmem:[#allocation5 + $0x804] ss:$48 sps:$4 sm:$0xff]  }
 0x102   : > { %2281 = vmatpush2.bf16.msra.mxu0 %v6189_v26  ;;  %v6279_v26 = vld [vmem:[#allocation5 + $0x200] ss:$48 sps:$4 sm:$0xff]  }
 0x103   : > { %2347 = vmatpush1.bf16.msra.mxu1 %v6192_v27  ;;  %2282 = vmatprep.subr.bf16.mxu0 %v6197_v28  ;;  %v6282_v27 = vld [vmem:[#allocation5 + $0x800] ss:$48 sps:$4 sm:$0xff]   ;;  %v6287_v28 = vld [vmem:[#allocation5 + $0x1a4] ss:$48 sps:$4 sm:$0xff]  }
 0x104   : > { %2348 = vmatprep.subr.bf16.mxu1 %v6200_v29  ;;  %v6290_v29 = vld [vmem:[#allocation5 + $0x7a4] ss:$48 sps:$4 sm:$0xff]  }
 0x106   : > { %2283 = vmatpush2.bf16.msra.mxu0 %v6195_v30  ;;  %v6285_v30 = vld [vmem:[#allocation5 + $0x1a0] ss:$48 sps:$4 sm:$0xff]  }
 0x107   : > { %2349 = vmatpush1.bf16.msra.mxu1 %v6198_v31  ;;  %2284 = vmatprep.subr.bf16.mxu0 %v6203_v32  ;;  %v6288_v31 = vld [vmem:[#allocation5 + $0x7a0] ss:$48 sps:$4 sm:$0xff]   ;;  %v6293_v32 = vld [vmem:[#allocation5 + $0x144] ss:$48 sps:$4 sm:$0xff]  }
 0x108   : > { %2350 = vmatprep.subr.bf16.mxu1 %v6206_v33  ;;  %v6296_v33 = vld [vmem:[#allocation5 + $0x744] ss:$48 sps:$4 sm:$0xff]  }
 0x10a   : > { %2285 = vmatpush2.bf16.msra.mxu0 %v6201_v34  ;;  %v6291_v34 = vld [vmem:[#allocation5 + $0x140] ss:$48 sps:$4 sm:$0xff]  }
 0x10b   : > { %2351 = vmatpush1.bf16.msra.mxu1 %v6204_v35  ;;  %2286 = vmatprep.subr.bf16.mxu0 %v6209_v37  ;;  %v6294_v35 = vld [vmem:[#allocation5 + $0x740] ss:$48 sps:$4 sm:$0xff]   ;;  %v6299_v37 = vld [vmem:[#allocation5 + $0xe4] ss:$48 sps:$4 sm:$0xff]  }
 0x10c   : > { %2352 = vmatprep.subr.bf16.mxu1 %v6212_v38  ;;  %v6302_v38 = vld [vmem:[#allocation5 + $0x6e4] ss:$48 sps:$4 sm:$0xff]  }
 0x10e   : > { %2287 = vmatpush2.bf16.msra.mxu0 %v6207_v39  ;;  %v6297_v39 = vld [vmem:[#allocation5 + $0xe0] ss:$48 sps:$4 sm:$0xff]  }
 0x10f   : > { %2353 = vmatpush1.bf16.msra.mxu1 %v6210_v40  ;;  %2288 = vmatprep.subr.bf16.mxu0 %v6215_v41  ;;  %v6300_v40 = vld [vmem:[#allocation5 + $0x6e0] ss:$48 sps:$4 sm:$0xff]   ;;  %v6305_v41 = vld [vmem:[#allocation5 + $0x84] ss:$48 sps:$4 sm:$0xff]  }
 0x110   : > { %2354 = vmatprep.subr.bf16.mxu1 %v6218_v42  ;;  %v6308_v42 = vld [vmem:[#allocation5 + $0x684] ss:$48 sps:$4 sm:$0xff]  }
 0x112   : > { %2289 = vmatpush2.bf16.msra.mxu0 %v6213_v43  ;;  %v6303_v43 = vld [vmem:[#allocation5 + $0x80] ss:$48 sps:$4 sm:$0xff]  }
 0x113   : > { %2355 = vmatpush1.bf16.msra.mxu1 %v6216_v44  ;;  %2381 = vmatprep.subr.bf16.mxu0 %v6224_v46  ;;  %v6306_v44 = vld [vmem:[#allocation5 + $0x680] ss:$48 sps:$4 sm:$0xff]   ;;  %v6314_v46 = vld [vmem:[#allocation5 + $0x624] ss:$48 sps:$4 sm:$0xff]  }
 0x114   : > { %2356 = vmatprep.subr.bf16.mxu1 %v6221_v45  ;;  %v6311_v45 = vld [vmem:[#allocation5 + $0x24] ss:$48 sps:$4 sm:$0xff]  }
 0x115   : > { %2291 = vmatmul.mubr.bf16.vlgmr.msra.gmra.mxu0 %v7216_v9 }
 0x116   : > { %2382 = vmatpush1.bf16.msra.mxu0 %v6222_v48  ;;  %2413 = vmatprep.mubr.bf16.mxu0 %v7011_v0  ;;  %v6312_v48 = vld [vmem:[#allocation5 + $0x620] ss:$48 sps:$4 sm:$0xff]  }
 0x117   : > { %2357 = vmatpush2.bf16.msra.mxu1 %v6219_v47  ;;  %2383 = vmatprep.subr.bf16.mxu0 %v6230_v50  ;;  %v6309_v47 = vld [vmem:[#allocation5 + $0x20] ss:$48 sps:$4 sm:$0xff]   ;;  %v6320_v50 = vld [vmem:[#allocation5 + $0x2cc] ss:$48 sps:$4 sm:$0xff]  }
 0x118   : > { %2358 = vmatprep.subr.bf16.mxu1 %v6227_v49  ;;  %v6317_v49 = vld [vmem:[#allocation5 + $0x5c4] ss:$48 sps:$4 sm:$0xff]  }
 0x11a   : > { %2384 = vmatpush1.bf16.msra.mxu0 %v6228_v52  ;;  %v6318_v52 = vld [vmem:[#allocation5 + $0x2c8] ss:$48 sps:$4 sm:$0xff]  }
 0x11b   : > { %2359 = vmatpush2.bf16.msra.mxu1 %v6225_v51  ;;  %2385 = vmatprep.subr.bf16.mxu0 %v6236_v55  ;;  %v6315_v51 = vld [vmem:[#allocation5 + $0x5c0] ss:$48 sps:$4 sm:$0xff]   ;;  %v6326_v55 = vld [vmem:[#allocation5 + $0x26c] ss:$48 sps:$4 sm:$0xff]  }
 0x11c   : > { %2360 = vmatprep.subr.bf16.mxu1 %v6233_v54  ;;  %v6323_v54 = vld [vmem:[#allocation5 + $0x564] ss:$48 sps:$4 sm:$0xff]  }
 0x11e   : > { %2386 = vmatpush1.bf16.msra.mxu0 %v6234_v57  ;;  %v6321_v57 = vld [vmem:[#allocation5 + $0x560] ss:$48 sps:$4 sm:$0xff]  }
 0x11f   : > { %2361 = vmatpush2.bf16.msra.mxu1 %v6231_v56  ;;  %2387 = vmatprep.subr.bf16.mxu0 %v6242_v59  ;;  %v6329_v59 = vld [vmem:[#allocation5 + $0x504] ss:$48 sps:$4 sm:$0xff]  }
 0x120   : > { %2362 = vmatprep.subr.bf16.mxu1 %v6239_v58  ;;  %v6324_v58 = vld [vmem:[#allocation5 + $0x268] ss:$48 sps:$4 sm:$0xff]  }
 0x122   : > { %2388 = vmatpush1.bf16.msra.mxu0 %v6240_v61  ;;  %v6332_v61 = vld [vmem:[#allocation5 + $0x20c] ss:$48 sps:$4 sm:$0xff]  }
 0x123   : > { %2363 = vmatpush2.bf16.msra.mxu1 %v6237_v60  ;;  %2389 = vmatprep.subr.bf16.mxu0 %v6248_v63  ;;  %v6327_v63 = vld [vmem:[#allocation5 + $0x500] ss:$48 sps:$4 sm:$0xff]  }
 0x124   : > { %2364 = vmatprep.subr.bf16.mxu1 %v6245_v62 }
 0x126   : > { %2390 = vmatpush1.bf16.msra.mxu0 %v6246_v2  ;;  %v6335_v2 = vld [vmem:[#allocation5 + $0x4a4] ss:$48 sps:$4 sm:$0xff]  }
 0x127   : > { %2365 = vmatpush2.bf16.msra.mxu1 %v6243_v1  ;;  %2391 = vmatprep.subr.bf16.mxu0 %v6254_v4  ;;  %v6330_v1 = vld [vmem:[#allocation5 + $0x208] ss:$48 sps:$4 sm:$0xff]   ;;  %v6338_v4 = vld [vmem:[#allocation5 + $0x1ac] ss:$48 sps:$4 sm:$0xff]  }
 0x128   : > { %2366 = vmatprep.subr.bf16.mxu1 %v6251_v3 }
 0x12a   : > { %2392 = vmatpush1.bf16.msra.mxu0 %v6252_v6  ;;  %v6336_v6 = vld [vmem:[#allocation5 + $0x1a8] ss:$48 sps:$4 sm:$0xff]  }
 0x12b   : > { %2367 = vmatpush2.bf16.msra.mxu1 %v6249_v5  ;;  %2393 = vmatprep.subr.bf16.mxu0 %v6260_v8  ;;  %v6333_v5 = vld [vmem:[#allocation5 + $0x4a0] ss:$48 sps:$4 sm:$0xff]   ;;  %v6344_v8 = vld [vmem:[#allocation5 + $0x14c] ss:$48 sps:$4 sm:$0xff]  }
 0x12c   : > { %2368 = vmatprep.subr.bf16.mxu1 %v6257_v7  ;;  %v6341_v7 = vld [vmem:[#allocation5 + $0x444] ss:$48 sps:$4 sm:$0xff]  }
 0x12e   : > { %2394 = vmatpush1.bf16.msra.mxu0 %v6258_v11  ;;  %v6347_v11 = vld [vmem:[#allocation5 + $0x3e4] ss:$48 sps:$4 sm:$0xff]  }
 0x12f   : > { %2369 = vmatpush2.bf16.msra.mxu1 %v6255_v10  ;;  %2395 = vmatprep.subr.bf16.mxu0 %v6266_v13  ;;  %v6339_v10 = vld [vmem:[#allocation5 + $0x440] ss:$48 sps:$4 sm:$0xff]  }
 0x130   : > { %2370 = vmatprep.subr.bf16.mxu1 %v6263_v12  ;;  %v6350_v12 = vld [vmem:[#allocation5 + $0xec] ss:$48 sps:$4 sm:$0xff]   ;;  %v6345_v13 = vld [vmem:[#allocation5 + $0x3e0] ss:$48 sps:$4 sm:$0xff]  }
 0x132   : > { %2396 = vmatpush1.bf16.msra.mxu0 %v6264_v15  ;;  %v6353_v15 = vld [vmem:[#allocation5 + $0x384] ss:$48 sps:$4 sm:$0xff]  }
 0x133   : > { %2371 = vmatpush2.bf16.msra.mxu1 %v6261_v14  ;;  %2422 = vmatprep.subr.bf16.mxu0 %v6269_v16  ;;  %v6348_v14 = vld [vmem:[#allocation5 + $0xe8] ss:$48 sps:$4 sm:$0xff]   ;;  %v594_v16 = vlaneseq }
 0x134   : > { %2463 = vmatprep.subr.bf16.mxu1 %v6272_v17  ;;  %v6356_v17 = vld [vmem:[#allocation5 + $0x8c] ss:$48 sps:$4 sm:$0xff]  }
 0x135   : > { %2414 = vmatmul.mubr.bf16.vlgmr.msra.gmra.mxu0 %v7207_v36 }
 0x136   : > { %2373 = vmatmul.mubr.bf16.vlgmr.msra.gmra.mxu1 %v7216_v9  ;;  %2423 = vmatpush1.bf16.msra.mxu0 %v6267_v18  ;;  %v6351_v18 = vld [vmem:[#allocation5 + $0x380] ss:$48 sps:$4 sm:$0xff]  }
 0x137   : > { %2464 = vmatpush1.bf16.msra.mxu1 %v6270_v19  ;;  %2424 = vmatprep.subr.bf16.mxu0 %v6275_v20  ;;  %v6354_v19 = vld [vmem:[#allocation5 + $0x88] ss:$48 sps:$4 sm:$0xff]   ;;  %v6359_v20 = vld [vmem:[#allocation5 + $0x324] ss:$48 sps:$4 sm:$0xff]  }
 0x138   : > { %2465 = vmatprep.subr.bf16.mxu1 %v6278_v21  ;;  %2495 = vmatprep.mubr.bf16.mxu1 %v7011_v0  ;;  %v7238_v21 = vshrl.u32 %v594_v16, 7 }
 0x139   : > { %2454 = vmatprep.mubr.bf16.mxu0 %v7211_v53 }
 0x13a   : > { %2425 = vmatpush1.bf16.msra.mxu0 %v6273_v22  ;;  %v6362_v22 = vld [vmem:[#allocation5 + $0x2c] ss:$48 sps:$4 sm:$0xff]  }
 0x13b   : > { %2466 = vmatpush1.bf16.msra.mxu1 %v6276_v23  ;;  %2426 = vmatprep.subr.bf16.mxu0 %v6281_v24  ;;  %v6357_v23 = vld [vmem:[#allocation5 + $0x320] ss:$48 sps:$4 sm:$0xff]   ;;  %v6360_v24 = vld [vmem:[#allocation5 + $0x28] ss:$48 sps:$4 sm:$0xff]  }
 0x13c   : > { %2467 = vmatprep.subr.bf16.mxu1 %v6284_v25  ;;  %v7240_v25 = vld [vmem:[#allocation7] sm:$0xff] }
 0x13e   : > { %2427 = vmatpush1.bf16.msra.mxu0 %v6279_v26  ;;  %v7243_v26 = vsub.s32 0, %v7238_v21 }
 0x13f   : > { %2468 = vmatpush1.bf16.msra.mxu1 %v6282_v27  ;;  %2428 = vmatprep.subr.bf16.mxu0 %v6287_v28  ;;  %v6365_v27 = vld [vmem:[#allocation5 + $0x5cc] ss:$48 sps:$4 sm:$0xff]  }
 0x140   : > { %2469 = vmatprep.subr.bf16.mxu1 %v6290_v29  ;;  %v6368_v28 = vld [vmem:[#allocation5 + $0x8cc] ss:$48 sps:$4 sm:$0xff]   ;;  %v6363_v29 = vld [vmem:[#allocation5 + $0x5c8] ss:$48 sps:$4 sm:$0xff]  }
 0x142   : > { %2429 = vmatpush1.bf16.msra.mxu0 %v6285_v30  ;;  %v6366_v30 = vld [vmem:[#allocation5 + $0x8c8] ss:$48 sps:$4 sm:$0xff]  }
 0x143   : > { %2470 = vmatpush1.bf16.msra.mxu1 %v6288_v31  ;;  %2430 = vmatprep.subr.bf16.mxu0 %v6293_v32  ;;  %v597_v31 = vrot.slane %v7240_v25, %v7243_v26  ;;  %v6371_v32 = vld [vmem:[#allocation5 + $0x56c] ss:$48 sps:$4 sm:$0xff]  }
 0x144   : > { %2471 = vmatprep.subr.bf16.mxu1 %v6296_v33  ;;  %v6374_v33 = vld [vmem:[#allocation5 + $0x86c] ss:$48 sps:$4 sm:$0xff]  }
 0x146   : > { %2431 = vmatpush1.bf16.msra.mxu0 %v6291_v34  ;;  %v6369_v34 = vld [vmem:[#allocation5 + $0x568] ss:$48 sps:$4 sm:$0xff]  }
 0x147   : > { %2472 = vmatpush1.bf16.msra.mxu1 %v6294_v35  ;;  %2432 = vmatprep.subr.bf16.mxu0 %v6299_v37  ;;  %v6372_v37 = vld [vmem:[#allocation5 + $0x868] ss:$48 sps:$4 sm:$0xff]  }
 0x148   : > { %2473 = vmatprep.subr.bf16.mxu1 %v6302_v38  ;;  %v6377_v38 = vld [vmem:[#allocation5 + $0x50c] ss:$48 sps:$4 sm:$0xff]  }
 0x14a   : > { %2433 = vmatpush1.bf16.msra.mxu0 %v6297_v39  ;;  %v6380_v39 = vld [vmem:[#allocation5 + $0x80c] ss:$48 sps:$4 sm:$0xff]  }
 0x14b   : > { %2474 = vmatpush1.bf16.msra.mxu1 %v6300_v40  ;;  %2434 = vmatprep.subr.bf16.mxu0 %v6305_v41 }
 0x14c   : > { %2475 = vmatprep.subr.bf16.mxu1 %v6308_v42 }
 0x14e   : > { %2435 = vmatpush1.bf16.msra.mxu0 %v6303_v43  ;;  %v6375_v43 = vld [vmem:[#allocation5 + $0x508] ss:$48 sps:$4 sm:$0xff]  }
 0x14f   : > { %2476 = vmatpush1.bf16.msra.mxu1 %v6306_v44  ;;  %2436 = vmatprep.subr.bf16.mxu0 %v6311_v45  ;;  %v6378_v44 = vld [vmem:[#allocation5 + $0x808] ss:$48 sps:$4 sm:$0xff]  }
 0x150   : > { %2477 = vmatprep.subr.bf16.mxu1 %v6314_v46  ;;  %v6383_v46 = vld [vmem:[#allocation5 + $0x4ac] ss:$48 sps:$4 sm:$0xff]  }
 0x152   : > { %2437 = vmatpush1.bf16.msra.mxu0 %v6309_v47  ;;  %v6386_v47 = vld [vmem:[#allocation5 + $0x7ac] ss:$48 sps:$4 sm:$0xff]  }
 0x153   : > { %2478 = vmatpush1.bf16.msra.mxu1 %v6312_v48  ;;  %2438 = vmatprep.subr.bf16.mxu0 %v6317_v49  ;;  %v6381_v49 = vld [vmem:[#allocation5 + $0x4a8] ss:$48 sps:$4 sm:$0xff]  }
 0x154   : > { %2504 = vmatprep.subr.bf16.mxu1 %v6320_v50  ;;  %v6384_v50 = vld [vmem:[#allocation5 + $0x7a8] ss:$48 sps:$4 sm:$0xff]  }
 0x156   : > { %v7232_v56 = vpop.f32.mrf.mxu1  ;;  %2496 = vmatmul.mubr.bf16.vlgmr.msra.gmra.mxu1 %v7207_v36  ;;  %2439 = vmatpush2.bf16.msra.mxu0 %v6315_v51  ;;  %v6389_v51 = vld [vmem:[#allocation5 + $0x44c] ss:$48 sps:$4 sm:$0xff]  }
 0x157   : > { %2505 = vmatpush1.bf16.msra.mxu1 %v6318_v52  ;;  %2440 = vmatprep.subr.bf16.mxu0 %v6323_v54  ;;  %v6392_v52 = vld [vmem:[#allocation5 + $0x74c] ss:$48 sps:$4 sm:$0xff]   ;;  %v7253_v54 = vsub.s32 1, %v7238_v21 }
 0x158   : > { %v7235_v60 = vpop.f32.mrf.mxu1  ;;  %2506 = vmatprep.subr.bf16.mxu1 %v6326_v55  ;;  %2536 = vmatprep.mubr.bf16.mxu1 %v7211_v53  ;;  %v6342_v53 = vld [vmem:[#allocation5 + $0x148] ss:$48 sps:$4 sm:$0xff]  }
 0x159   : > { %v6390_v55 = vld [vmem:[#allocation5 + $0x748] ss:$48 sps:$4 sm:$0xff]  }
 0x15a   : > { %v2173_v62 = vpop.f32.mrf.mxu1  ;;  %2441 = vmatpush2.bf16.msra.mxu0 %v6321_v57  ;;  %v6398_v57 = vld [vmem:[#allocation5 + $0x6ec] ss:$48 sps:$4 sm:$0xff]  }
 0x15b   : > { %2507 = vmatpush1.bf16.msra.mxu1 %v6324_v58  ;;  %2442 = vmatprep.subr.bf16.mxu0 %v6329_v59  ;;  %v601_v58 = vrot.slane %v7240_v25, %v7253_v54  ;;  %v6393_v59 = vld [vmem:[#allocation5 + $0x3e8] ss:$48 sps:$4 sm:$0xff]   ;;  %v6401_v62 = vld [vmem:[#allocation5 + $0x38c] ss:$48 sps:$4 sm:$0xff]  }
 0x15c   : > { %v2174_v3 = vpop.f32.mrf.mxu1  ;;  %2508 = vmatprep.subr.bf16.mxu1 %v6332_v61  ;;  %v6396_v61 = vld [vmem:[#allocation5 + $0x6e8] ss:$48 sps:$4 sm:$0xff]  }
 0x15d   : > { %v6402_v3 = vld [vmem:[#allocation5 + $0x688] ss:$48 sps:$4 sm:$0xff]  }
 0x15e   : > { %2443 = vmatpush2.bf16.msra.mxu0 %v6327_v63  ;;  %v6404_v63 = vld [vmem:[#allocation5 + $0x68c] ss:$48 sps:$4 sm:$0xff]  }
 0x15f   : > { %2509 = vmatpush1.bf16.msra.mxu1 %v6330_v1  ;;  %2444 = vmatprep.subr.bf16.mxu0 %v6335_v2  ;;  %v6399_v2 = vld [vmem:[#allocation5 + $0x388] ss:$48 sps:$4 sm:$0xff]  }
 0x160   : > { %2510 = vmatprep.subr.bf16.mxu1 %v6338_v4  ;;  %v6407_v4 = vld [vmem:[#allocation5 + $0x32c] ss:$48 sps:$4 sm:$0xff]  }
 0x162   : > { %2445 = vmatpush2.bf16.msra.mxu0 %v6333_v5  ;;  %v6410_v5 = vld [vmem:[#allocation5 + $0x62c] ss:$48 sps:$4 sm:$0xff]  }
 0x163   : > { %2511 = vmatpush1.bf16.msra.mxu1 %v6336_v6  ;;  %2446 = vmatprep.subr.bf16.mxu0 %v6341_v7  ;;  %v6405_v7 = vld [vmem:[#allocation5 + $0x328] ss:$48 sps:$4 sm:$0xff]  }
 0x164   : > { %2512 = vmatprep.subr.bf16.mxu1 %v6344_v8  ;;  %v6408_v8 = vld [vmem:[#allocation5 + $0x628] ss:$48 sps:$4 sm:$0xff]  }
 0x166   : > { %2447 = vmatpush2.bf16.msra.mxu0 %v6339_v10  ;;  %v6413_v10 = vld [vmem:[#allocation8 + $0xac] ss:$12 sps:$4 sm:$0xff]  }
 0x167   : > { %2513 = vmatpush1.bf16.msra.mxu1 %v6342_v53  ;;  %2448 = vmatprep.subr.bf16.mxu0 %v6347_v11  ;;  %v6416_v53 = vld [vmem:[#allocation8 + $0x22c] ss:$12 sps:$4 sm:$0xff]  }
 0x168   : > { %2514 = vmatprep.subr.bf16.mxu1 %v6350_v12  ;;  %v6411_v12 = vld [vmem:[#allocation8 + $0xa8] ss:$12 sps:$4 sm:$0xff]  }
 0x16a   : > { %2449 = vmatpush2.bf16.msra.mxu0 %v6345_v13  ;;  %v608_v13 = vsub.s32 3, %v7238_v21 }
 0x16b   : > { %2515 = vmatpush1.bf16.msra.mxu1 %v6348_v14  ;;  %2450 = vmatprep.subr.bf16.mxu0 %v6353_v15  ;;  %v6414_v14 = vld [vmem:[#allocation8 + $0x228] ss:$12 sps:$4 sm:$0xff]  }
 0x16c   : > { %2516 = vmatprep.subr.bf16.mxu1 %v6356_v17  ;;  %v6419_v15 = vld [vmem:[#allocation8 + $0x94] ss:$12 sps:$4 sm:$0xff]   ;;  %v6417_v17 = vld [vmem:[#allocation8 + $0x90] ss:$12 sps:$4 sm:$0xff]  }
 0x16e   : > { %2451 = vmatpush2.bf16.msra.mxu0 %v6351_v18  ;;  %v6422_v18 = vld [vmem:[#allocation8 + $0x214] ss:$12 sps:$4 sm:$0xff]  }
 0x16f   : > { %2517 = vmatpush1.bf16.msra.mxu1 %v6354_v19  ;;  %2452 = vmatprep.subr.bf16.mxu0 %v6359_v20 }
 0x170   : > { %2518 = vmatprep.subr.bf16.mxu1 %v6362_v22  ;;  %v6420_v22 = vld [vmem:[#allocation8 + $0x210] ss:$12 sps:$4 sm:$0xff]  }
 0x172   : > { %2453 = vmatpush2.bf16.msra.mxu0 %v6357_v23  ;;  %v6425_v23 = vld [vmem:[#allocation8 + $0x7c] ss:$12 sps:$4 sm:$0xff]  }
 0x173   : > { %2519 = vmatpush1.bf16.msra.mxu1 %v6360_v24  ;;  %2545 = vmatprep.subr.bf16.mxu0 %v6368_v28 }
 0x174   : > { %2520 = vmatprep.subr.bf16.mxu1 %v6365_v27 }
 0x175   : > { %v2128_v35 = vpop.f32.mrf.mxu0  ;;  %2455 = vmatmul.mubr.bf16.vlgmr.msra.gmra.mxu0 %v7216_v9 }
 0x176   : > { %v2129_v40 = vadd.f32 %v2128_v35, %v597_v31  ;;  %2546 = vmatpush1.bf16.msra.mxu0 %v6366_v30  ;;  %2577 = vmatprep.mubr.bf16.mxu0 %v7011_v0  ;;  %v6387_v0 = vld [vmem:[#allocation5 + $0x448] ss:$48 sps:$4 sm:$0xff]   ;;  %v6431_v35 = vld [vmem:[#allocation8 + $0x64] ss:$12 sps:$4 sm:$0xff]  }
 0x177   : > { %2521 = vmatpush2.bf16.msra.mxu1 %v6363_v29  ;;  %v2130_v41 = vpop.f32.mrf.mxu0  ;;  %2547 = vmatprep.subr.bf16.mxu0 %v6374_v33  ;;  %v6423_v29 = vld [vmem:[#allocation8 + $0x78] ss:$12 sps:$4 sm:$0xff]   ;;  %v6428_v30 = vld [vmem:[#allocation8 + $0x1fc] ss:$12 sps:$4 sm:$0xff]  }
 0x178   : > { %2522 = vmatprep.subr.bf16.mxu1 %v6371_v32  ;;  %v7249_v42 = vadd.f32 %v7232_v56, %v2129_v40  ;;  %v6395_v56 = vld [vmem:[#allocation5 + $0x3ec] ss:$48 sps:$4 sm:$0xff]   ;;  %v2131_v1 = vadd.f32 %v2130_v41, %v601_v58  ;;  %v6426_v33 = vld [vmem:[#allocation8 + $0x1f8] ss:$12 sps:$4 sm:$0xff]  }
 0x179   : > { %v2132_v45 = vpop.f32.mrf.mxu0  ;;  %v6429_v40 = vld [vmem:[#allocation8 + $0x60] ss:$12 sps:$4 sm:$0xff]   ;;  %v6458_v58 = vld [vmem:[#allocation8 + $0x184] ss:$12 sps:$4 sm:$0xff]  }
 0x17a   : > { %2548 = vmatpush1.bf16.msra.mxu0 %v6372_v37  ;;  %v2172_v6 = vadd.f32 %v7235_v60, %v2131_v1  ;;  %v609_v60 = vrot.slane %v7240_v25, %v608_v13  ;;  %v6434_v37 = vld [vmem:[#allocation8 + $0x1e4] ss:$12 sps:$4 sm:$0xff]   ;;  %v6432_v41 = vld [vmem:[#allocation8 + $0x1e0] ss:$12 sps:$4 sm:$0xff]   ;;  %v6435_v45 = vld [vmem:[#allocation8 + $0x48] ss:$12 sps:$4 sm:$0xff]  }
 0x17b   : > { %2523 = vmatpush2.bf16.msra.mxu1 %v6369_v34  ;;  %v2133_v48 = vpop.f32.mrf.mxu0  ;;  %2549 = vmatprep.subr.bf16.mxu0 %v6380_v39  ;;  %v6459_v1 = vld [vmem:[#allocation8 + $0x168] ss:$12 sps:$4 sm:$0xff]  }
 0x17c   : > { %2524 = vmatprep.subr.bf16.mxu1 %v6377_v38  ;;  %v2587_v11 = vmax.f32 %v2172_v6, 0.0  ;;  %v6446_v48 = vld [vmem:[#allocation8 + $0x1b4] ss:$12 sps:$4 sm:$0xff]  }
 0x17e   : > { %2550 = vmatpush1.bf16.msra.mxu0 %v6378_v44  ;;  %v7259_v16 = vpack.c.bf16 %v2587_v11, %v2587_v11  ;;  %v6440_v44 = vld [vmem:[#allocation8 + $0x1cc] ss:$12 sps:$4 sm:$0xff]   ;;  %v6476_v11 = vld [vmem:[#allocation8 + $0x2bc] ss:$12 sps:$4 sm:$0xff]  }
 0x17f   : > { %2525 = vmatpush2.bf16.msra.mxu1 %v6375_v43  ;;  %2551 = vmatprep.subr.bf16.mxu0 %v6386_v47  ;;  %v6437_v43 = vld [vmem:[#allocation8 + $0x4c] ss:$12 sps:$4 sm:$0xff]   ;;  %v6443_v47 = vld [vmem:[#allocation8 + $0x34] ss:$12 sps:$4 sm:$0xff]  }
 0x180   : > { %2526 = vmatprep.subr.bf16.mxu1 %v6383_v46  ;;  %v6438_v46 = vld [vmem:[#allocation8 + $0x1c8] ss:$12 sps:$4 sm:$0xff]  }
 0x182   : > { %2552 = vmatpush1.bf16.msra.mxu0 %v6384_v50  ;;  %v6441_v50 = vld [vmem:[#allocation8 + $0x30] ss:$12 sps:$4 sm:$0xff]  }
 0x183   : > { %2527 = vmatpush2.bf16.msra.mxu1 %v6381_v49  ;;  %2553 = vmatprep.subr.bf16.mxu0 %v6392_v52  ;;  %v7275_v49 = vsub.s32 2, %v7238_v21  ;;  %v6449_v52 = vld [vmem:[#allocation8 + $0x1c] ss:$12 sps:$4 sm:$0xff]  }
 0x184   : > { %2528 = vmatprep.subr.bf16.mxu1 %v6389_v51  ;;  %v6444_v51 = vld [vmem:[#allocation8 + $0x1b0] ss:$12 sps:$4 sm:$0xff]  }
 0x186   : > { %2554 = vmatpush1.bf16.msra.mxu0 %v6390_v55  ;;  %v6447_v55 = vld [vmem:[#allocation8 + $0x18] ss:$12 sps:$4 sm:$0xff]  }
 0x187   : > { %2529 = vmatpush2.bf16.msra.mxu1 %v6387_v0  ;;  %2555 = vmatprep.subr.bf16.mxu0 %v6398_v57  ;;  %v6452_v0 = vld [vmem:[#allocation8 + $0x19c] ss:$12 sps:$4 sm:$0xff]   ;;  %v6455_v57 = vld [vmem:[#allocation8 + $0x4] ss:$12 sps:$4 sm:$0xff]  }
 0x188   : > { %2530 = vmatprep.subr.bf16.mxu1 %v6395_v56  ;;  %v6450_v56 = vld [vmem:[#allocation8 + $0x198] ss:$12 sps:$4 sm:$0xff]  }
 0x18a   : > { %2556 = vmatpush1.bf16.msra.mxu0 %v6396_v61  ;;  %v6456_v61 = vld [vmem:[#allocation8 + $0x180] ss:$12 sps:$4 sm:$0xff]  }
 0x18b   : > { %2531 = vmatpush2.bf16.msra.mxu1 %v6393_v59  ;;  %2557 = vmatprep.subr.bf16.mxu0 %v6404_v63  ;;  %v6453_v59 = vld [vmem:[#allocation8] ss:$12 sps:$4 sm:$0xff]  }
 0x18c   : > { %2532 = vmatprep.subr.bf16.mxu1 %v6401_v62  ;;  %v6461_v62 = vld [vmem:[#allocation8 + $0x16c] ss:$12 sps:$4 sm:$0xff]  }
 0x18d   : > { %v6464_v63 = vld [vmem:[#allocation8 + $0x2ec] ss:$12 sps:$4 sm:$0xff]  }
 0x18e   : > { %2558 = vmatpush1.bf16.msra.mxu0 %v6402_v3  ;;  %v6467_v3 = vld [vmem:[#allocation8 + $0x154] ss:$12 sps:$4 sm:$0xff]  }
 0x18f   : > { %2533 = vmatpush2.bf16.msra.mxu1 %v6399_v2  ;;  %2559 = vmatprep.subr.bf16.mxu0 %v6410_v5  ;;  %v6462_v2 = vld [vmem:[#allocation8 + $0x2e8] ss:$12 sps:$4 sm:$0xff]  }
 0x190   : > { %2534 = vmatprep.subr.bf16.mxu1 %v6407_v4  ;;  %v6465_v4 = vld [vmem:[#allocation8 + $0x150] ss:$12 sps:$4 sm:$0xff]   ;;  %v6470_v5 = vld [vmem:[#allocation8 + $0x2d4] ss:$12 sps:$4 sm:$0xff]  }
 0x192   : > { %2560 = vmatpush1.bf16.msra.mxu0 %v6408_v8 }
 0x193   : > { %2535 = vmatpush2.bf16.msra.mxu1 %v6405_v7  ;;  %4547 = vmatprep.subr.bf16.mxu0 %v6413_v10  ;;  %v6468_v7 = vld [vmem:[#allocation8 + $0x2d0] ss:$12 sps:$4 sm:$0xff]  }
 0x194   : > { %4588 = vmatprep.subr.bf16.mxu1 %v6416_v53  ;;  %v6473_v10 = vld [vmem:[#allocation8 + $0x13c] ss:$12 sps:$4 sm:$0xff]   ;;  %v6471_v53 = vld [vmem:[#allocation8 + $0x138] ss:$12 sps:$4 sm:$0xff]  }
 0x195   : > { %v7266_v20 = vpop.f32.mrf.mxu0  ;;  %2578 = vmatmul.mubr.bf16.vlgmr.msra.gmra.mxu0 %v7207_v36 }
 0x196   : > { %v7264_v19 = vpop.f32.mrf.mxu1  ;;  %2537 = vmatmul.mubr.bf16.vlgmr.msra.gmra.mxu1 %v7216_v9  ;;  %4548 = vmatpush1.bf16.msra.mxu0 %v6411_v12 }
 0x197   : > { %4579 = vmatprep.mubr.bf16.mxu0 %v7259_v16  ;;  %4589 = vmatpush1.bf16.msra.mxu1 %v6414_v14  ;;  %v2253_v27 = vpop.f32.mrf.mxu0  ;;  %v6474_v14 = vld [vmem:[#allocation8 + $0x2b8] ss:$12 sps:$4 sm:$0xff]  }
 0x198   : > { %v2212_v24 = vpop.f32.mrf.mxu1  ;;  %4549 = vmatprep.subr.bf16.mxu0 %v6419_v15  ;;  %4590 = vmatprep.subr.bf16.mxu1 %v6422_v18  ;;  %v6482_v18 = vld [vmem:[#allocation8 + $0x2a4] ss:$12 sps:$4 sm:$0xff]  }
 0x199   : > { %v2213_v28 = vadd.f32 %v2212_v24, %v609_v60  ;;  %v2255_v32 = vpop.f32.mrf.mxu0  ;;  %v6479_v60 = vld [vmem:[#allocation8 + $0x124] ss:$12 sps:$4 sm:$0xff]   ;;  %v6483_v24 = vld [vmem:[#allocation8 + $0x108] ss:$12 sps:$4 sm:$0xff]  }
 0x19a   : > { %v2214_v31 = vpop.f32.mrf.mxu1  ;;  %4550 = vmatpush1.bf16.msra.mxu0 %v6417_v17  ;;  %v6477_v17 = vld [vmem:[#allocation8 + $0x120] ss:$12 sps:$4 sm:$0xff]  }
 0x19b   : > { %v2254_v34 = vadd.f32 %v2253_v27, %v2213_v28  ;;  %4591 = vmatpush1.bf16.msra.mxu1 %v6420_v22  ;;  %v2256_v9 = vpop.f32.mrf.mxu0  ;;  %4551 = vmatprep.subr.bf16.mxu0 %v6425_v23  ;;  %v6480_v22 = vld [vmem:[#allocation8 + $0x2a0] ss:$12 sps:$4 sm:$0xff]   ;;  %v6486_v28 = vld [vmem:[#allocation8 + $0x288] ss:$12 sps:$4 sm:$0xff]   ;;  %v605_v31 = vrot.slane %v7240_v25, %v7275_v49 }
 0x19c   : > { %v2215_v36 = vpop.f32.mrf.mxu1  ;;  %4592 = vmatprep.subr.bf16.mxu1 %v6428_v30  ;;  %v6485_v23 = vld [vmem:[#allocation8 + $0x10c] ss:$12 sps:$4 sm:$0xff]   ;;  %v616_v30 = vsub.s32 5, %v7238_v21  ;;  %v6494_v32 = vld [vmem:[#allocation8 + $0x274] ss:$12 sps:$4 sm:$0xff]  }
 0x19d   : > { %v2589_v38 = vmax.f32 %v2254_v34, 0.0  ;;  %v6488_v27 = vld [vmem:[#allocation8 + $0x28c] ss:$12 sps:$4 sm:$0xff]   ;;  %v6492_v34 = vld [vmem:[#allocation8 + $0x270] ss:$12 sps:$4 sm:$0xff]   ;;  %v2211_v9 = vadd.f32 %v7264_v19, %v605_v31  ;;  %v2586_v19 = vmax.f32 %v7249_v42, 0.0 }
 0x19e   : > { %4552 = vmatpush1.bf16.msra.mxu0 %v6423_v29  ;;  %v6491_v29 = vld [vmem:[#allocation8 + $0xf4] ss:$12 sps:$4 sm:$0xff]   ;;  %v6497_v36 = vld [vmem:[#allocation8 + $0xdc] ss:$12 sps:$4 sm:$0xff]   ;;  %v6554_v31 = vld [vmem:[#allocation8 + $0x484] ss:$12 sps:$4 sm:$0xff]  }
 0x19f   : > { %v7271_v39 = vpack.c.bf16 %v2589_v38, %v2589_v38  ;;  %4593 = vmatpush1.bf16.msra.mxu1 %v6426_v33  ;;  %4553 = vmatprep.subr.bf16.mxu0 %v6431_v35  ;;  %v6489_v33 = vld [vmem:[#allocation8 + $0xf0] ss:$12 sps:$4 sm:$0xff]   ;;  %v6498_v38 = vld [vmem:[#allocation8 + $0x258] ss:$12 sps:$4 sm:$0xff]  }
 0x1a0   : > { %4594 = vmatprep.subr.bf16.mxu1 %v6434_v37  ;;  %v6500_v35 = vld [vmem:[#allocation8 + $0x25c] ss:$12 sps:$4 sm:$0xff]   ;;  %v6495_v37 = vld [vmem:[#allocation8 + $0xd8] ss:$12 sps:$4 sm:$0xff]  }
 0x1a1   : > { %4620 = vmatprep.mubr.bf16.mxu1 %v7271_v39 }
 0x1a2   : > { %4554 = vmatpush1.bf16.msra.mxu0 %v6429_v40  ;;  %v6503_v40 = vld [vmem:[#allocation8 + $0xc4] ss:$12 sps:$4 sm:$0xff]  }
 0x1a3   : > { %4595 = vmatpush1.bf16.msra.mxu1 %v6432_v41  ;;  %4555 = vmatprep.subr.bf16.mxu0 %v6437_v43  ;;  %v2252_v41 = vadd.f32 %v7266_v20, %v2211_v9  ;;  %v6506_v43 = vld [vmem:[#allocation8 + $0x244] ss:$12 sps:$4 sm:$0xff]   ;;  %v7287_v20 = vpack.c.bf16 %v2586_v19, %v2586_v19  ;;  %v624_v9 = vsub.s32 7, %v7238_v21 }
 0x1a4   : > { %4596 = vmatprep.subr.bf16.mxu1 %v6440_v44  ;;  %v6501_v44 = vld [vmem:[#allocation8 + $0xc0] ss:$12 sps:$4 sm:$0xff]  }
 0x1a6   : > { %4556 = vmatpush1.bf16.msra.mxu0 %v6435_v45  ;;  %v6504_v45 = vld [vmem:[#allocation8 + $0x240] ss:$12 sps:$4 sm:$0xff]  }
 0x1a7   : > { %4597 = vmatpush1.bf16.msra.mxu1 %v6438_v46  ;;  %4557 = vmatprep.subr.bf16.mxu0 %v6443_v47  ;;  %v6509_v46 = vld [vmem:[#allocation8 + $0x3ac] ss:$12 sps:$4 sm:$0xff]  }
 0x1a8   : > { %4598 = vmatprep.subr.bf16.mxu1 %v6446_v48  ;;  %v6512_v47 = vld [vmem:[#allocation8 + $0x52c] ss:$12 sps:$4 sm:$0xff]   ;;  %v2588_v48 = vmax.f32 %v2252_v41, 0.0 }
 0x1aa   : > { %4558 = vmatpush1.bf16.msra.mxu0 %v6441_v50  ;;  %v6507_v50 = vld [vmem:[#allocation8 + $0x3a8] ss:$12 sps:$4 sm:$0xff]  }
 0x1ab   : > { %4599 = vmatpush1.bf16.msra.mxu1 %v6444_v51  ;;  %4559 = vmatprep.subr.bf16.mxu0 %v6449_v52  ;;  %v6510_v51 = vld [vmem:[#allocation8 + $0x528] ss:$12 sps:$4 sm:$0xff]  }
 0x1ac   : > { %4600 = vmatprep.subr.bf16.mxu1 %v6452_v0  ;;  %v6515_v52 = vld [vmem:[#allocation8 + $0x394] ss:$12 sps:$4 sm:$0xff]   ;;  %v7289_v0 = vpack.c.bf16 %v2588_v48, %v2588_v48  ;;  %v6564_v48 = vld [vmem:[#allocation8 + $0x5d0] ss:$12 sps:$4 sm:$0xff]  }
 0x1ae   : > { %4560 = vmatpush1.bf16.msra.mxu0 %v6447_v55  ;;  %v617_v55 = vrot.slane %v7240_v25, %v616_v30  ;;  %v6551_v30 = vld [vmem:[#allocation8 + $0x304] ss:$12 sps:$4 sm:$0xff]  }
 0x1af   : > { %4601 = vmatpush1.bf16.msra.mxu1 %v6450_v56  ;;  %4561 = vmatprep.subr.bf16.mxu0 %v6455_v57  ;;  %v6513_v56 = vld [vmem:[#allocation8 + $0x390] ss:$12 sps:$4 sm:$0xff]   ;;  %v6518_v57 = vld [vmem:[#allocation8 + $0x514] ss:$12 sps:$4 sm:$0xff]  }
 0x1b0   : > { %4602 = vmatprep.subr.bf16.mxu1 %v6458_v58  ;;  %v6516_v58 = vld [vmem:[#allocation8 + $0x510] ss:$12 sps:$4 sm:$0xff]  }
 0x1b2   : > { %4562 = vmatpush1.bf16.msra.mxu0 %v6453_v59 }
 0x1b3   : > { %4603 = vmatpush1.bf16.msra.mxu1 %v6456_v61  ;;  %4563 = vmatprep.subr.bf16.mxu0 %v6461_v62  ;;  %v6521_v61 = vld [vmem:[#allocation8 + $0x37c] ss:$12 sps:$4 sm:$0xff]  }
 0x1b4   : > { %4604 = vmatprep.subr.bf16.mxu1 %v6464_v63  ;;  %v6524_v63 = vld [vmem:[#allocation8 + $0x4fc] ss:$12 sps:$4 sm:$0xff]  }
 0x1b6   : > { %v7277_v6 = vpop.f32.mrf.mxu1  ;;  %4564 = vmatpush2.bf16.msra.mxu0 %v6459_v1 }
 0x1b7   : > { %4605 = vmatpush2.bf16.msra.mxu1 %v6462_v2  ;;  %4565 = vmatprep.subr.bf16.mxu0 %v6467_v3  ;;  %v6519_v2 = vld [vmem:[#allocation8 + $0x378] ss:$12 sps:$4 sm:$0xff]  }
 0x1b8   : > { %v7279_v8 = vpop.f32.mrf.mxu1  ;;  %4606 = vmatprep.subr.bf16.mxu1 %v6470_v5  ;;  %v6522_v3 = vld [vmem:[#allocation8 + $0x4f8] ss:$12 sps:$4 sm:$0xff]  }
 0x1b9   : > { %v6527_v5 = vld [vmem:[#allocation8 + $0x364] ss:$12 sps:$4 sm:$0xff]  }
 0x1ba   : > { %v2337_v12 = vpop.f32.mrf.mxu1  ;;  %4566 = vmatpush2.bf16.msra.mxu0 %v6465_v4 }
 0x1bb   : > { %4607 = vmatpush2.bf16.msra.mxu1 %v6468_v7  ;;  %4567 = vmatprep.subr.bf16.mxu0 %v6473_v10  ;;  %v6525_v10 = vld [vmem:[#allocation8 + $0x360] ss:$12 sps:$4 sm:$0xff]  }
 0x1bc   : > { %v2338_v15 = vpop.f32.mrf.mxu1  ;;  %4608 = vmatprep.subr.bf16.mxu1 %v6476_v11  ;;  %v6528_v11 = vld [vmem:[#allocation8 + $0x4e0] ss:$12 sps:$4 sm:$0xff]  }
 0x1bd   : > { %v6531_v15 = vld [vmem:[#allocation8 + $0x348] ss:$12 sps:$4 sm:$0xff]  }
 0x1be   : > { %4568 = vmatpush2.bf16.msra.mxu0 %v6471_v53  ;;  %v6530_v53 = vld [vmem:[#allocation8 + $0x4e4] ss:$12 sps:$4 sm:$0xff]  }
 0x1bf   : > { %4609 = vmatpush2.bf16.msra.mxu1 %v6474_v14  ;;  %4569 = vmatprep.subr.bf16.mxu0 %v6479_v60  ;;  %v6533_v14 = vld [vmem:[#allocation8 + $0x34c] ss:$12 sps:$4 sm:$0xff]   ;;  %v6534_v60 = vld [vmem:[#allocation8 + $0x4c8] ss:$12 sps:$4 sm:$0xff]  }
 0x1c0   : > { %4610 = vmatprep.subr.bf16.mxu1 %v6482_v18  ;;  %v6542_v18 = vld [vmem:[#allocation8 + $0x4b4] ss:$12 sps:$4 sm:$0xff]  }
 0x1c2   : > { %4570 = vmatpush2.bf16.msra.mxu0 %v6477_v17  ;;  %v6539_v17 = vld [vmem:[#allocation8 + $0x334] ss:$12 sps:$4 sm:$0xff]  }
 0x1c3   : > { %4611 = vmatpush2.bf16.msra.mxu1 %v6480_v22  ;;  %4571 = vmatprep.subr.bf16.mxu0 %v6485_v23  ;;  %v6537_v22 = vld [vmem:[#allocation8 + $0x330] ss:$12 sps:$4 sm:$0xff]  }
 0x1c4   : > { %4612 = vmatprep.subr.bf16.mxu1 %v6488_v27  ;;  %v6540_v23 = vld [vmem:[#allocation8 + $0x4b0] ss:$12 sps:$4 sm:$0xff]  }
 0x1c5   : > { %v6548_v27 = vld [vmem:[#allocation8 + $0x49c] ss:$12 sps:$4 sm:$0xff]  }
 0x1c6   : > { %4572 = vmatpush2.bf16.msra.mxu0 %v6483_v24  ;;  %v6545_v24 = vld [vmem:[#allocation8 + $0x31c] ss:$12 sps:$4 sm:$0xff]  }
 0x1c7   : > { %4613 = vmatpush2.bf16.msra.mxu1 %v6486_v28  ;;  %4573 = vmatprep.subr.bf16.mxu0 %v6491_v29  ;;  %v6543_v28 = vld [vmem:[#allocation8 + $0x318] ss:$12 sps:$4 sm:$0xff]  }
 0x1c8   : > { %4614 = vmatprep.subr.bf16.mxu1 %v6494_v32  ;;  %v6546_v29 = vld [vmem:[#allocation8 + $0x498] ss:$12 sps:$4 sm:$0xff]   ;;  %v6549_v32 = vld [vmem:[#allocation8 + $0x300] ss:$12 sps:$4 sm:$0xff]  }
 0x1ca   : > { %4574 = vmatpush2.bf16.msra.mxu0 %v6489_v33  ;;  %v6552_v33 = vld [vmem:[#allocation8 + $0x480] ss:$12 sps:$4 sm:$0xff]  }
 0x1cb   : > { %4615 = vmatpush2.bf16.msra.mxu1 %v6492_v34  ;;  %4575 = vmatprep.subr.bf16.mxu0 %v6497_v36  ;;  %v6557_v34 = vld [vmem:[#allocation8 + $0x46c] ss:$12 sps:$4 sm:$0xff]  }
 0x1cc   : > { %4616 = vmatprep.subr.bf16.mxu1 %v6500_v35  ;;  %v6560_v36 = vld [vmem:[#allocation8 + $0x5ec] ss:$12 sps:$4 sm:$0xff]   ;;  %v6555_v35 = vld [vmem:[#allocation8 + $0x468] ss:$12 sps:$4 sm:$0xff]  }
 0x1ce   : > { %4576 = vmatpush2.bf16.msra.mxu0 %v6495_v37  ;;  %v6558_v37 = vld [vmem:[#allocation8 + $0x5e8] ss:$12 sps:$4 sm:$0xff]  }
 0x1cf   : > { %4617 = vmatpush2.bf16.msra.mxu1 %v6498_v38  ;;  %4577 = vmatprep.subr.bf16.mxu0 %v6503_v40  ;;  %v6563_v38 = vld [vmem:[#allocation8 + $0x454] ss:$12 sps:$4 sm:$0xff]  }
 0x1d0   : > { %4618 = vmatprep.subr.bf16.mxu1 %v6506_v43  ;;  %v6795_v40 = vld [vmem:[#allocation7] sm:$0xff] }
 0x1d1   : > { %v625_v41 = vrot.slane %v6795_v40, %v624_v9  ;;  %v6566_v43 = vld [vmem:[#allocation8 + $0x5d4] ss:$12 sps:$4 sm:$0xff]  }
 0x1d2   : > { %4578 = vmatpush2.bf16.msra.mxu0 %v6501_v44  ;;  %v6600_v9 = vld [vmem:[#allocation8 + $0x540] ss:$12 sps:$4 sm:$0xff]  }
 0x1d3   : > { %4619 = vmatpush2.bf16.msra.mxu1 %v6504_v45  ;;  %4629 = vmatprep.subr.bf16.mxu0 %v6509_v46  ;;  %v6561_v46 = vld [vmem:[#allocation8 + $0x450] ss:$12 sps:$4 sm:$0xff]  }
 0x1d4   : > { %4670 = vmatprep.subr.bf16.mxu1 %v6512_v47 }
 0x1d5   : > { %v7292_v42 = vpop.f32.mrf.mxu0  ;;  %4580 = vmatmul.mubr.bf16.vlgmr.msra.gmra.mxu0 %v7287_v20 }
 0x1d6   : > { %4621 = vmatmul.mubr.bf16.vlgmr.msra.gmra.mxu1 %v7289_v0  ;;  %4630 = vmatpush1.bf16.msra.mxu0 %v6507_v50  ;;  %v6569_v50 = vld [vmem:[#allocation8 + $0x43c] ss:$12 sps:$4 sm:$0xff]  }
 0x1d7   : > { %4671 = vmatpush1.bf16.msra.mxu1 %v6510_v51  ;;  %v2294_v59 = vpop.f32.mrf.mxu0  ;;  %4631 = vmatprep.subr.bf16.mxu0 %v6515_v52  ;;  %v6572_v52 = vld [vmem:[#allocation8 + $0x5bc] ss:$12 sps:$4 sm:$0xff]  }
 0x1d8   : > { %v2295_v62 = vadd.f32 %v2294_v59, %v617_v55  ;;  %4672 = vmatprep.subr.bf16.mxu1 %v6518_v57  ;;  %v6570_v59 = vld [vmem:[#allocation8 + $0x5b8] ss:$12 sps:$4 sm:$0xff]  }
 0x1d9   : > { %v2296_v1 = vpop.f32.mrf.mxu0 }
 0x1da   : > { %v2336_v25 = vadd.f32 %v7279_v8, %v2295_v62  ;;  %4632 = vmatpush1.bf16.msra.mxu0 %v6513_v56  ;;  %v6536_v8 = vld [vmem:[#allocation8 + $0x4cc] ss:$12 sps:$4 sm:$0xff]   ;;  %v612_v1 = vsub.s32 4, %v7238_v21 }
 0x1db   : > { %4673 = vmatpush1.bf16.msra.mxu1 %v6516_v58  ;;  %v2297_v4 = vpop.f32.mrf.mxu0  ;;  %4633 = vmatprep.subr.bf16.mxu0 %v6521_v61  ;;  %v6567_v58 = vld [vmem:[#allocation8 + $0x438] ss:$12 sps:$4 sm:$0xff]  }
 0x1dc   : > { %v2591_v7 = vmax.f32 %v2336_v25, 0.0  ;;  %4674 = vmatprep.subr.bf16.mxu1 %v6524_v63  ;;  %v6575_v63 = vld [vmem:[#allocation8 + $0x424] ss:$12 sps:$4 sm:$0xff]   ;;  %v6573_v25 = vld [vmem:[#allocation8 + $0x420] ss:$12 sps:$4 sm:$0xff]  }
 0x1dd   : > { %v6576_v4 = vld [vmem:[#allocation8 + $0x5a0] ss:$12 sps:$4 sm:$0xff]  }
 0x1de   : > { %v7297_v12 = vpack.c.bf16 %v2591_v7, %v2591_v7  ;;  %4634 = vmatpush1.bf16.msra.mxu0 %v6519_v2  ;;  %v6581_v7 = vld [vmem:[#allocation8 + $0x40c] ss:$12 sps:$4 sm:$0xff]  }
 0x1df   : > { %4675 = vmatpush1.bf16.msra.mxu1 %v6522_v3  ;;  %4635 = vmatprep.subr.bf16.mxu0 %v6527_v5  ;;  %v6578_v3 = vld [vmem:[#allocation8 + $0x5a4] ss:$12 sps:$4 sm:$0xff]  }
 0x1e0   : > { %4661 = vmatprep.mubr.bf16.mxu0 %v7297_v12  ;;  %4676 = vmatprep.subr.bf16.mxu1 %v6530_v53  ;;  %v6584_v53 = vld [vmem:[#allocation8 + $0x58c] ss:$12 sps:$4 sm:$0xff]  }
 0x1e2   : > { %4636 = vmatpush1.bf16.msra.mxu0 %v6525_v10  ;;  %v620_v10 = vsub.s32 6, %v7238_v21 }
 0x1e3   : > { %4677 = vmatpush1.bf16.msra.mxu1 %v6528_v11  ;;  %4637 = vmatprep.subr.bf16.mxu0 %v6533_v14  ;;  %v6579_v11 = vld [vmem:[#allocation8 + $0x408] ss:$12 sps:$4 sm:$0xff]   ;;  %v613_v14 = vrot.slane %v6795_v40, %v612_v1  ;;  %v6638_v1 = vld [vmem:[#allocation8 + $0x7cc] ss:$12 sps:$4 sm:$0xff]  }
 0x1e4   : > { %4678 = vmatprep.subr.bf16.mxu1 %v6536_v8  ;;  %v6582_v8 = vld [vmem:[#allocation8 + $0x588] ss:$12 sps:$4 sm:$0xff]  }
 0x1e6   : > { %4638 = vmatpush1.bf16.msra.mxu0 %v6531_v15  ;;  %v6587_v15 = vld [vmem:[#allocation8 + $0x3f4] ss:$12 sps:$4 sm:$0xff]  }
 0x1e7   : > { %4679 = vmatpush1.bf16.msra.mxu1 %v6534_v60  ;;  %4639 = vmatprep.subr.bf16.mxu0 %v6539_v17  ;;  %v621_v60 = vrot.slane %v6795_v40, %v620_v10  ;;  %v6590_v17 = vld [vmem:[#allocation8 + $0x574] ss:$12 sps:$4 sm:$0xff]   ;;  %v6635_v10 = vld [vmem:[#allocation8 + $0x61c] ss:$12 sps:$4 sm:$0xff]  }
 0x1e8   : > { %4680 = vmatprep.subr.bf16.mxu1 %v6542_v18  ;;  %v6585_v18 = vld [vmem:[#allocation8 + $0x3f0] ss:$12 sps:$4 sm:$0xff]  }
 0x1ea   : > { %4640 = vmatpush1.bf16.msra.mxu0 %v6537_v22  ;;  %v2293_v22 = vadd.f32 %v7292_v42, %v613_v14  ;;  %v6597_v42 = vld [vmem:[#allocation8 + $0x3c0] ss:$12 sps:$4 sm:$0xff]   ;;  %v6633_v14 = vld [vmem:[#allocation8 + $0x618] ss:$12 sps:$4 sm:$0xff]  }
 0x1eb   : > { %4681 = vmatpush1.bf16.msra.mxu1 %v6540_v23  ;;  %4641 = vmatprep.subr.bf16.mxu0 %v6545_v24  ;;  %v6588_v23 = vld [vmem:[#allocation8 + $0x570] ss:$12 sps:$4 sm:$0xff]  }
 0x1ec   : > { %4682 = vmatprep.subr.bf16.mxu1 %v6548_v27  ;;  %v6593_v24 = vld [vmem:[#allocation8 + $0x3dc] ss:$12 sps:$4 sm:$0xff]  }
 0x1ee   : > { %4642 = vmatpush1.bf16.msra.mxu0 %v6543_v28  ;;  %v6596_v28 = vld [vmem:[#allocation8 + $0x55c] ss:$12 sps:$4 sm:$0xff]  }
 0x1ef   : > { %4683 = vmatpush1.bf16.msra.mxu1 %v6546_v29  ;;  %4643 = vmatprep.subr.bf16.mxu0 %v6551_v30  ;;  %v6591_v29 = vld [vmem:[#allocation8 + $0x3d8] ss:$12 sps:$4 sm:$0xff]   ;;  %v2334_v30 = vadd.f32 %v7277_v6, %v2293_v22  ;;  %v6603_v6 = vld [vmem:[#allocation8 + $0x6a8] ss:$12 sps:$4 sm:$0xff]   ;;  %v6654_v22 = vld [vmem:[#allocation8 + $0x780] ss:$12 sps:$4 sm:$0xff]  }
 0x1f0   : > { %4684 = vmatprep.subr.bf16.mxu1 %v6554_v31  ;;  %v6594_v31 = vld [vmem:[#allocation8 + $0x558] ss:$12 sps:$4 sm:$0xff]  }
 0x1f2   : > { %4644 = vmatpush1.bf16.msra.mxu0 %v6549_v32  ;;  %v6599_v32 = vld [vmem:[#allocation8 + $0x3c4] ss:$12 sps:$4 sm:$0xff]  }
 0x1f3   : > { %4685 = vmatpush1.bf16.msra.mxu1 %v6552_v33  ;;  %4645 = vmatprep.subr.bf16.mxu0 %v6557_v34  ;;  %v6602_v34 = vld [vmem:[#allocation8 + $0x544] ss:$12 sps:$4 sm:$0xff]  }
 0x1f4   : > { %4686 = vmatprep.subr.bf16.mxu1 %v6560_v36  ;;  %v2590_v36 = vmax.f32 %v2334_v30, 0.0 }
 0x1f5   : > { %v7301_v45 = vpop.f32.mrf.mxu0 }
 0x1f6   : > { %v2374_v44 = vpop.f32.mrf.mxu1  ;;  %4646 = vmatpush2.bf16.msra.mxu0 %v6555_v35  ;;  %v6605_v35 = vld [vmem:[#allocation8 + $0x6ac] ss:$12 sps:$4 sm:$0xff]   ;;  %v7311_v40 = vpack.c.bf16 %v2590_v36, %v2590_v36  ;;  %v6666_v36 = vld [vmem:[#allocation8 + $0x8d0] ss:$12 sps:$4 sm:$0xff]  }
 0x1f7   : > { %4687 = vmatpush2.bf16.msra.mxu1 %v6558_v37  ;;  %v2417_v19 = vpop.f32.mrf.mxu0  ;;  %4647 = vmatprep.subr.bf16.mxu0 %v6563_v38  ;;  %v2375_v27 = vadd.f32 %v2374_v44, %v621_v60  ;;  %v6614_v38 = vld [vmem:[#allocation8 + $0x82c] ss:$12 sps:$4 sm:$0xff]   ;;  %v6656_v60 = vld [vmem:[#allocation8 + $0x784] ss:$12 sps:$4 sm:$0xff]  }
 0x1f8   : > { %v2376_v47 = vpop.f32.mrf.mxu1  ;;  %4688 = vmatprep.subr.bf16.mxu1 %v6566_v43  ;;  %v6612_v43 = vld [vmem:[#allocation8 + $0x828] ss:$12 sps:$4 sm:$0xff]  }
 0x1f9   : > { %v2377_v51 = vadd.f32 %v2376_v47, %v625_v41  ;;  %v2419_v56 = vpop.f32.mrf.mxu0  ;;  %v2416_v33 = vadd.f32 %v7301_v45, %v2375_v27  ;;  %v6608_v41 = vld [vmem:[#allocation8 + $0x694] ss:$12 sps:$4 sm:$0xff]   ;;  %v6606_v47 = vld [vmem:[#allocation8 + $0x690] ss:$12 sps:$4 sm:$0xff]  }
 0x1fa   : > { %v2378_v55 = vpop.f32.mrf.mxu1  ;;  %4648 = vmatpush2.bf16.msra.mxu0 %v6561_v46  ;;  %v6620_v45 = vld [vmem:[#allocation8 + $0x814] ss:$12 sps:$4 sm:$0xff]   ;;  %v7321_v27 = vld [vmem:[#allocation7 + $0x8] sm:$0xf] }
 0x1fb   : > { %v2418_v57 = vadd.f32 %v2417_v19, %v2377_v51  ;;  %4689 = vmatpush2.bf16.msra.mxu1 %v6564_v48  ;;  %v2420_v62 = vpop.f32.mrf.mxu0  ;;  %4649 = vmatprep.subr.bf16.mxu0 %v6569_v50  ;;  %v2592_v37 = vmax.f32 %v2416_v33, 0.0  ;;  %v6611_v48 = vld [vmem:[#allocation8 + $0x67c] ss:$12 sps:$4 sm:$0xff]   ;;  %v6609_v55 = vld [vmem:[#allocation8 + $0x678] ss:$12 sps:$4 sm:$0xff]   ;;  %v633_v30 = vrot.slane %v7321_v27, %v7253_v54 }
 0x1fc   : > { %v2379_v61 = vpop.f32.mrf.mxu1  ;;  %4690 = vmatprep.subr.bf16.mxu1 %v6572_v52  ;;  %v6618_v50 = vld [vmem:[#allocation8 + $0x810] ss:$12 sps:$4 sm:$0xff]   ;;  %v6623_v62 = vld [vmem:[#allocation8 + $0x64c] ss:$12 sps:$4 sm:$0xff]  }
 0x1fd   : > { %v2593_v2 = vmax.f32 %v2418_v57, 0.0  ;;  %v7313_v44 = vpack.c.bf16 %v2592_v37, %v2592_v37  ;;  %v6626_v51 = vld [vmem:[#allocation8 + $0x7fc] ss:$12 sps:$4 sm:$0xff]   ;;  %v6617_v57 = vld [vmem:[#allocation8 + $0x664] ss:$12 sps:$4 sm:$0xff]  }
 0x1fe   : > { %4650 = vmatpush2.bf16.msra.mxu0 %v6567_v58  ;;  %v6624_v58 = vld [vmem:[#allocation8 + $0x7f8] ss:$12 sps:$4 sm:$0xff]   ;;  %v6615_v61 = vld [vmem:[#allocation8 + $0x660] ss:$12 sps:$4 sm:$0xff]   ;;  %v6651_v33 = vld [vmem:[#allocation8 + $0x750] ss:$12 sps:$4 sm:$0xff]  }
 0x1ff   : > { %v7304_v5 = vpack.c.bf16 %v2593_v2, %v2593_v2  ;;  %4691 = vmatpush2.bf16.msra.mxu1 %v6570_v59  ;;  %4651 = vmatprep.subr.bf16.mxu0 %v6575_v63  ;;  %v6632_v59 = vld [vmem:[#allocation8 + $0x7e4] ss:$12 sps:$4 sm:$0xff]   ;;  %v6630_v63 = vld [vmem:[#allocation8 + $0x7e0] ss:$12 sps:$4 sm:$0xff]   ;;  %v6621_v2 = vld [vmem:[#allocation8 + $0x648] ss:$12 sps:$4 sm:$0xff]  }
 0x200   : > { %4692 = vmatprep.subr.bf16.mxu1 %v6578_v3  ;;  %v6636_v3 = vld [vmem:[#allocation8 + $0x7c8] ss:$12 sps:$4 sm:$0xff]  }
 0x201   : > { %4702 = vmatprep.mubr.bf16.mxu1 %v7304_v5 }
 0x202   : > { %4652 = vmatpush2.bf16.msra.mxu0 %v6573_v25  ;;  %v6629_v25 = vld [vmem:[#allocation8 + $0x634] ss:$12 sps:$4 sm:$0xff]  }
 0x203   : > { %4693 = vmatpush2.bf16.msra.mxu1 %v6576_v4  ;;  %4653 = vmatprep.subr.bf16.mxu0 %v6581_v7  ;;  %v6644_v4 = vld [vmem:[#allocation8 + $0x7b4] ss:$12 sps:$4 sm:$0xff]   ;;  %v6627_v7 = vld [vmem:[#allocation8 + $0x630] ss:$12 sps:$4 sm:$0xff]  }
 0x204   : > { %4694 = vmatprep.subr.bf16.mxu1 %v6584_v53  ;;  %v6642_v53 = vld [vmem:[#allocation8 + $0x7b0] ss:$12 sps:$4 sm:$0xff]  }
 0x206   : > { %4654 = vmatpush2.bf16.msra.mxu0 %v6579_v11  ;;  %v6650_v11 = vld [vmem:[#allocation8 + $0x79c] ss:$12 sps:$4 sm:$0xff]  }
 0x207   : > { %4695 = vmatpush2.bf16.msra.mxu1 %v6582_v8  ;;  %4655 = vmatprep.subr.bf16.mxu0 %v6587_v15  ;;  %v6641_v8 = vld [vmem:[#allocation8 + $0x604] ss:$12 sps:$4 sm:$0xff]  }
 0x208   : > { %4696 = vmatprep.subr.bf16.mxu1 %v6590_v17  ;;  %v6648_v15 = vld [vmem:[#allocation8 + $0x798] ss:$12 sps:$4 sm:$0xff]   ;;  %v6639_v17 = vld [vmem:[#allocation8 + $0x600] ss:$12 sps:$4 sm:$0xff]  }
 0x20a   : > { %4656 = vmatpush2.bf16.msra.mxu0 %v6585_v18  ;;  %v6647_v18 = vld [vmem:[#allocation8 + $0x76c] ss:$12 sps:$4 sm:$0xff]  }
 0x20b   : > { %4697 = vmatpush2.bf16.msra.mxu1 %v6588_v23  ;;  %4657 = vmatprep.subr.bf16.mxu0 %v6593_v24  ;;  %v6662_v23 = vld [vmem:[#allocation8 + $0x8ec] ss:$12 sps:$4 sm:$0xff]   ;;  %v6645_v24 = vld [vmem:[#allocation8 + $0x768] ss:$12 sps:$4 sm:$0xff]  }
 0x20c   : > { %4698 = vmatprep.subr.bf16.mxu1 %v6596_v28  ;;  %v6653_v28 = vld [vmem:[#allocation8 + $0x754] ss:$12 sps:$4 sm:$0xff]  }
 0x20e   : > { %4658 = vmatpush2.bf16.msra.mxu0 %v6591_v29  ;;  %v6660_v29 = vld [vmem:[#allocation8 + $0x8e8] ss:$12 sps:$4 sm:$0xff]  }
 0x20f   : > { %4699 = vmatpush2.bf16.msra.mxu1 %v6594_v31  ;;  %4659 = vmatprep.subr.bf16.mxu0 %v6599_v32  ;;  %v6668_v31 = vld [vmem:[#allocation8 + $0x8d4] ss:$12 sps:$4 sm:$0xff]  }
 0x210   : > { %4700 = vmatprep.subr.bf16.mxu1 %v6602_v34 }
 0x212   : > { %4660 = vmatpush2.bf16.msra.mxu0 %v6597_v42  ;;  %v6659_v42 = vld [vmem:[#allocation8 + $0x73c] ss:$12 sps:$4 sm:$0xff]  }
 0x213   : > { %4701 = vmatpush2.bf16.msra.mxu1 %v6600_v9  ;;  %4711 = vmatprep.subr.bf16.mxu0 %v6605_v35  ;;  %v6674_v35 = vld [vmem:[#allocation8 + $0x8bc] ss:$12 sps:$4 sm:$0xff]  }
 0x214   : > { %4752 = vmatprep.subr.bf16.mxu1 %v6614_v38 }
 0x215   : > { %4662 = vmatmul.mubr.bf16.vlgmr.msra.gmra.mxu0 %v7311_v40 }
 0x216   : > { %v7315_v46 = vpop.f32.mrf.mxu1  ;;  %4703 = vmatmul.mubr.bf16.vlgmr.msra.gmra.mxu1 %v7313_v44  ;;  %4712 = vmatpush1.bf16.msra.mxu0 %v6603_v6  ;;  %v6657_v6 = vld [vmem:[#allocation8 + $0x738] ss:$12 sps:$4 sm:$0xff]  }
 0x217   : > { %4713 = vmatprep.subr.bf16.mxu0 %v6608_v41  ;;  %4753 = vmatpush1.bf16.msra.mxu1 %v6612_v43  ;;  %v6665_v43 = vld [vmem:[#allocation8 + $0x724] ss:$12 sps:$4 sm:$0xff]  }
 0x218   : > { %v7319_v19 = vpop.f32.mrf.mxu1  ;;  %4754 = vmatprep.subr.bf16.mxu1 %v6620_v45  ;;  %v6672_v45 = vld [vmem:[#allocation8 + $0x8b8] ss:$12 sps:$4 sm:$0xff]  }
 0x21a   : > { %v2501_v52 = vpop.f32.mrf.mxu1  ;;  %4714 = vmatpush1.bf16.msra.mxu0 %v6606_v47 }
 0x21b   : > { %4715 = vmatprep.subr.bf16.mxu0 %v6611_v48  ;;  %4755 = vmatpush1.bf16.msra.mxu1 %v6618_v50  ;;  %v6680_v48 = vld [vmem:[#allocation8 + $0x8a4] ss:$12 sps:$4 sm:$0xff]   ;;  %v6671_v52 = vld [vmem:[#allocation8 + $0x70c] ss:$12 sps:$4 sm:$0xff]  }
 0x21c   : > { %v2502_v56 = vpop.f32.mrf.mxu1  ;;  %4756 = vmatprep.subr.bf16.mxu1 %v6626_v51  ;;  %v6663_v51 = vld [vmem:[#allocation8 + $0x720] ss:$12 sps:$4 sm:$0xff]  }
 0x21d   : > { %v6669_v56 = vld [vmem:[#allocation8 + $0x708] ss:$12 sps:$4 sm:$0xff]  }
 0x21e   : > { %4716 = vmatpush1.bf16.msra.mxu0 %v6609_v55  ;;  %v6678_v55 = vld [vmem:[#allocation8 + $0x8a0] ss:$12 sps:$4 sm:$0xff]  }
 0x21f   : > { %4717 = vmatprep.subr.bf16.mxu0 %v6617_v57  ;;  %4757 = vmatpush1.bf16.msra.mxu1 %v6624_v58  ;;  %v629_v57 = vrot.slane %v7321_v27, %v7243_v26  ;;  %v6677_v58 = vld [vmem:[#allocation8 + $0x6f4] ss:$12 sps:$4 sm:$0xff]  }
 0x220   : > { %4758 = vmatprep.subr.bf16.mxu1 %v6632_v59  ;;  %v6684_v59 = vld [vmem:[#allocation8 + $0x888] ss:$12 sps:$4 sm:$0xff]  }
 0x222   : > { %4718 = vmatpush1.bf16.msra.mxu0 %v6615_v61  ;;  %v6692_v61 = vld [vmem:[#allocation8 + $0x874] ss:$12 sps:$4 sm:$0xff]  }
 0x223   : > { %4719 = vmatprep.subr.bf16.mxu0 %v6623_v62  ;;  %4759 = vmatpush1.bf16.msra.mxu1 %v6630_v63  ;;  %v6675_v62 = vld [vmem:[#allocation8 + $0x6f0] ss:$12 sps:$4 sm:$0xff]  }
 0x224   : > { %4760 = vmatprep.subr.bf16.mxu1 %v6638_v1  ;;  %v6683_v1 = vld [vmem:[#allocation8 + $0x6dc] ss:$12 sps:$4 sm:$0xff]  }
 0x226   : > { %4720 = vmatpush1.bf16.msra.mxu0 %v6621_v2  ;;  %v6690_v2 = vld [vmem:[#allocation8 + $0x870] ss:$12 sps:$4 sm:$0xff]  }
 0x227   : > { %4721 = vmatprep.subr.bf16.mxu0 %v6629_v25  ;;  %4761 = vmatpush1.bf16.msra.mxu1 %v6636_v3  ;;  %v6697_v25 = vld [vmem:[#allocation8 + $0x85c] ss:$12 sps:$4 sm:$0xff]   ;;  %v6681_v3 = vld [vmem:[#allocation8 + $0x6d8] ss:$12 sps:$4 sm:$0xff]  }
 0x228   : > { %4762 = vmatprep.subr.bf16.mxu1 %v6644_v4 }
 0x22a   : > { %4722 = vmatpush1.bf16.msra.mxu0 %v6627_v7  ;;  %v6689_v7 = vld [vmem:[#allocation8 + $0x6c4] ss:$12 sps:$4 sm:$0xff]  }
 0x22b   : > { %4723 = vmatprep.subr.bf16.mxu0 %v6635_v10  ;;  %4763 = vmatpush1.bf16.msra.mxu1 %v6642_v53  ;;  %v6695_v10 = vld [vmem:[#allocation8 + $0x858] ss:$12 sps:$4 sm:$0xff]  }
 0x22c   : > { %4764 = vmatprep.subr.bf16.mxu1 %v6650_v11  ;;  %v6702_v53 = vld [vmem:[#allocation8 + $0x844] ss:$12 sps:$4 sm:$0xff]   ;;  %v6687_v11 = vld [vmem:[#allocation8 + $0x6c0] ss:$12 sps:$4 sm:$0xff]  }
 0x22e   : > { %4724 = vmatpush1.bf16.msra.mxu0 %v6633_v14 }
 0x22f   : > { %4725 = vmatprep.subr.bf16.mxu0 %v6641_v8  ;;  %4765 = vmatpush1.bf16.msra.mxu1 %v6648_v15  ;;  %v6693_v8 = vld [vmem:[#allocation8 + $0x170] ss:$12 sps:$4 sm:$0xff]   ;;  %v6700_v15 = vld [vmem:[#allocation8 + $0x840] ss:$12 sps:$4 sm:$0xff]  }
 0x230   : > { %4766 = vmatprep.subr.bf16.mxu1 %v6656_v60  ;;  %v6705_v60 = vld [vmem:[#allocation8 + $0x2f0] ss:$12 sps:$4 sm:$0xff]  }
 0x232   : > { %4726 = vmatpush1.bf16.msra.mxu0 %v6639_v17  ;;  %v637_v17 = vrot.slane %v7321_v27, %v7275_v49 }
 0x233   : > { %4727 = vmatprep.subr.bf16.mxu0 %v6647_v18  ;;  %4767 = vmatpush1.bf16.msra.mxu1 %v6654_v22  ;;  %v6698_v22 = vld [vmem:[#allocation8 + $0x158] ss:$12 sps:$4 sm:$0xff]  }
 0x234   : > { %4768 = vmatprep.subr.bf16.mxu1 %v6662_v23  ;;  %v641_v23 = vrot.slane %v7321_v27, %v608_v13  ;;  %v6704_v13 = vld [vmem:[#allocation8 + $0x80] ss:$12 sps:$4 sm:$0xff]  }
 0x235   : > { %v2456_v32 = vpop.f32.mrf.mxu0 }
 0x236   : > { %4728 = vmatpush2.bf16.msra.mxu0 %v6645_v24  ;;  %v2457_v63 = vadd.f32 %v2456_v32, %v629_v57  ;;  %v6716_v57 = vld [vmem:[#allocation8 + $0x38] ss:$12 sps:$4 sm:$0xff]  }
 0x237   : > { %v2458_v34 = vpop.f32.mrf.mxu0  ;;  %4729 = vmatprep.subr.bf16.mxu0 %v6653_v28  ;;  %4769 = vmatpush2.bf16.msra.mxu1 %v6660_v29 }
 0x238   : > { %v2459_v9 = vadd.f32 %v2458_v34, %v633_v30  ;;  %4770 = vmatprep.subr.bf16.mxu1 %v6668_v31  ;;  %v2498_v4 = vadd.f32 %v7315_v46, %v2457_v63  ;;  %v6694_v46 = vld [vmem:[#allocation8 + $0xb0] ss:$12 sps:$4 sm:$0xff]   ;;  %v6699_v30 = vld [vmem:[#allocation8 + $0x98] ss:$12 sps:$4 sm:$0xff]  }
 0x239   : > { %v2460_v37 = vpop.f32.mrf.mxu0  ;;  %v6721_v63 = vld [vmem:[#allocation8 + $0x290] ss:$12 sps:$4 sm:$0xff]  }
 0x23a   : > { %v2500_v38 = vadd.f32 %v7319_v19, %v2459_v9  ;;  %4730 = vmatpush2.bf16.msra.mxu0 %v6651_v33  ;;  %v6686_v19 = vld [vmem:[#allocation8 + $0x88c] ss:$12 sps:$4 sm:$0xff]   ;;  %v2594_v14 = vmax.f32 %v2498_v4, 0.0 }
 0x23b   : > { %v2461_v41 = vpop.f32.mrf.mxu0  ;;  %4731 = vmatprep.subr.bf16.mxu0 %v6659_v42  ;;  %4771 = vmatpush2.bf16.msra.mxu1 %v6666_v36  ;;  %v6703_v33 = vld [vmem:[#allocation8 + $0x140] ss:$12 sps:$4 sm:$0xff]   ;;  %v6726_v4 = vld [vmem:[#allocation8 + $0x1b8] ss:$12 sps:$4 sm:$0xff]  }
 0x23c   : > { %v2595_v47 = vmax.f32 %v2500_v38, 0.0  ;;  %4772 = vmatprep.subr.bf16.mxu1 %v6674_v35  ;;  %v7334_v18 = vpack.c.bf16 %v2594_v14, %v2594_v14  ;;  %v6706_v38 = vld [vmem:[#allocation8 + $0x128] ss:$12 sps:$4 sm:$0xff]   ;;  %v6732_v14 = vld [vmem:[#allocation8 + $0x398] ss:$12 sps:$4 sm:$0xff]  }
 0x23e   : > { %v7326_v50 = vpack.c.bf16 %v2595_v47, %v2595_v47  ;;  %4732 = vmatpush2.bf16.msra.mxu0 %v6657_v6  ;;  %v6709_v47 = vld [vmem:[#allocation8 + $0x2d8] ss:$12 sps:$4 sm:$0xff]  }
 0x23f   : > { %4733 = vmatprep.subr.bf16.mxu0 %v6665_v43  ;;  %4773 = vmatpush2.bf16.msra.mxu1 %v6672_v45  ;;  %v6708_v43 = vld [vmem:[#allocation8 + $0x68] ss:$12 sps:$4 sm:$0xff]  }
 0x240   : > { %4743 = vmatprep.mubr.bf16.mxu0 %v7326_v50  ;;  %4774 = vmatprep.subr.bf16.mxu1 %v6680_v48  ;;  %v6710_v48 = vld [vmem:[#allocation8 + $0x110] ss:$12 sps:$4 sm:$0xff]  }
 0x242   : > { %4734 = vmatpush2.bf16.msra.mxu0 %v6663_v51  ;;  %v6711_v51 = vld [vmem:[#allocation8 + $0x218] ss:$12 sps:$4 sm:$0xff]  }
 0x243   : > { %4735 = vmatprep.subr.bf16.mxu0 %v6671_v52  ;;  %4775 = vmatpush2.bf16.msra.mxu1 %v6678_v55  ;;  %v6712_v52 = vld [vmem:[#allocation8 + $0x50] ss:$12 sps:$4 sm:$0xff]   ;;  %v6713_v55 = vld [vmem:[#allocation8 + $0x2c0] ss:$12 sps:$4 sm:$0xff]  }
 0x244   : > { %4776 = vmatprep.subr.bf16.mxu1 %v6686_v19  ;;  %v6714_v19 = vld [vmem:[#allocation8 + $0xf8] ss:$12 sps:$4 sm:$0xff]  }
 0x246   : > { %4736 = vmatpush2.bf16.msra.mxu0 %v6669_v56  ;;  %v6715_v56 = vld [vmem:[#allocation8 + $0x200] ss:$12 sps:$4 sm:$0xff]  }
 0x247   : > { %4737 = vmatprep.subr.bf16.mxu0 %v6677_v58  ;;  %4777 = vmatpush2.bf16.msra.mxu1 %v6684_v59  ;;  %v6717_v58 = vld [vmem:[#allocation8 + $0x2a8] ss:$12 sps:$4 sm:$0xff]   ;;  %v6718_v59 = vld [vmem:[#allocation8 + $0xe0] ss:$12 sps:$4 sm:$0xff]  }
 0x248   : > { %4778 = vmatprep.subr.bf16.mxu1 %v6692_v61  ;;  %v6719_v61 = vld [vmem:[#allocation8 + $0x1e8] ss:$12 sps:$4 sm:$0xff]  }
 0x24a   : > { %4738 = vmatpush2.bf16.msra.mxu0 %v6675_v62  ;;  %v6720_v62 = vld [vmem:[#allocation8 + $0x20] ss:$12 sps:$4 sm:$0xff]  }
 0x24b   : > { %4739 = vmatprep.subr.bf16.mxu0 %v6683_v1  ;;  %4779 = vmatpush2.bf16.msra.mxu1 %v6690_v2  ;;  %v6723_v1 = vld [vmem:[#allocation8 + $0x1d0] ss:$12 sps:$4 sm:$0xff]   ;;  %v6724_v2 = vld [vmem:[#allocation8 + $0x8] ss:$12 sps:$4 sm:$0xff]  }
 0x24c   : > { %4780 = vmatprep.subr.bf16.mxu1 %v6697_v25  ;;  %v6725_v25 = vld [vmem:[#allocation8 + $0x278] ss:$12 sps:$4 sm:$0xff]  }
 0x24e   : > { %4740 = vmatpush2.bf16.msra.mxu0 %v6681_v3  ;;  %v6727_v3 = vld [vmem:[#allocation8 + $0x470] ss:$12 sps:$4 sm:$0xff]  }
 0x24f   : > { %4741 = vmatprep.subr.bf16.mxu0 %v6689_v7  ;;  %4781 = vmatpush2.bf16.msra.mxu1 %v6695_v10  ;;  %v6728_v7 = vld [vmem:[#allocation8 + $0x3b0] ss:$12 sps:$4 sm:$0xff]   ;;  %v6729_v10 = vld [vmem:[#allocation8 + $0x260] ss:$12 sps:$4 sm:$0xff]  }
 0x250   : > { %4782 = vmatprep.subr.bf16.mxu1 %v6702_v53  ;;  %v6731_v53 = vld [vmem:[#allocation8 + $0x458] ss:$12 sps:$4 sm:$0xff]  }
 0x252   : > { %4742 = vmatpush2.bf16.msra.mxu0 %v6687_v11  ;;  %v6730_v11 = vld [vmem:[#allocation8 + $0x1a0] ss:$12 sps:$4 sm:$0xff]  }
 0x253   : > { %5751 = vmatprep.subr.bf16.mxu0 %v6693_v8  ;;  %4783 = vmatpush2.bf16.msra.mxu1 %v6700_v15  ;;  %v6733_v8 = vld [vmem:[#allocation8 + $0x248] ss:$12 sps:$4 sm:$0xff]   ;;  %v6735_v15 = vld [vmem:[#allocation8 + $0x440] ss:$12 sps:$4 sm:$0xff]  }
 0x254   : > { %5773 = vmatprep.subr.bf16.mxu1 %v6705_v60  ;;  %v6734_v60 = vld [vmem:[#allocation8 + $0x188] ss:$12 sps:$4 sm:$0xff]  }
 0x255   : > { %v2579_v28 = vpop.f32.mrf.mxu0  ;;  %4744 = vmatmul.mubr.bf16.vlgmr.msra.gmra.mxu0 %v7334_v18 }
 0x256   : > { %v2538_v24 = vpop.f32.mrf.mxu1  ;;  %5752 = vmatpush3.bf16.msra.mxu0 %v6694_v46  ;;  %4825 = vmatprep.mubr.bf16.mxu0 %v7259_v16  ;;  %v6707_v16 = vld [vmem:[#allocation8 + $0x230] ss:$12 sps:$4 sm:$0xff]  }
 0x257   : > { %v2539_v29 = vadd.f32 %v2538_v24, %v637_v17  ;;  %v2581_v32 = vpop.f32.mrf.mxu0  ;;  %5753 = vmatprep.subr.bf16.mxu0 %v6698_v22  ;;  %v6736_v17 = vld [vmem:[#allocation8 + $0x380] ss:$12 sps:$4 sm:$0xff]   ;;  %v6737_v46 = vld [vmem:[#allocation8 + $0x5f0] ss:$12 sps:$4 sm:$0xff]   ;;  %v6738_v22 = vld [vmem:[#allocation8 + $0x428] ss:$12 sps:$4 sm:$0xff]  }
 0x258   : > { %v2540_v31 = vpop.f32.mrf.mxu1  ;;  %v6741_v24 = vld [vmem:[#allocation8 + $0x5d8] ss:$12 sps:$4 sm:$0xff]  }
 0x259   : > { %v2580_v34 = vadd.f32 %v2579_v28, %v2539_v29  ;;  %v2541_v42 = vadd.f32 %v2540_v31, %v641_v23  ;;  %v2583_v21 = vpop.f32.mrf.mxu0  ;;  %v6740_v23 = vld [vmem:[#allocation8 + $0x368] ss:$12 sps:$4 sm:$0xff]   ;;  %v6743_v28 = vld [vmem:[#allocation8 + $0x518] ss:$12 sps:$4 sm:$0xff]   ;;  %v6744_v29 = vld [vmem:[#allocation8 + $0x350] ss:$12 sps:$4 sm:$0xff]  }
 0x25a   : > { %v2542_v36 = vpop.f32.mrf.mxu1  ;;  %5754 = vmatpush3.bf16.msra.mxu0 %v6699_v30  ;;  %v6745_v30 = vld [vmem:[#allocation8 + $0x5c0] ss:$12 sps:$4 sm:$0xff]   ;;  %v6746_v31 = vld [vmem:[#allocation8 + $0x3f8] ss:$12 sps:$4 sm:$0xff]   ;;  %v6754_v21 = vld [vmem:[#allocation8 + $0x3c8] ss:$12 sps:$4 sm:$0xff]  }
 0x25b   : > { %v2582_v9 = vadd.f32 %v2581_v32, %v2541_v42  ;;  %v2596_v27 = vmax.f32 %v2580_v34, 0.0  ;;  %v2584_v37 = vpop.f32.mrf.mxu0  ;;  %5755 = vmatprep.subr.bf16.mxu0 %v6703_v33  ;;  %v6747_v32 = vld [vmem:[#allocation8 + $0x500] ss:$12 sps:$4 sm:$0xff]   ;;  %v6748_v33 = vld [vmem:[#allocation8 + $0x338] ss:$12 sps:$4 sm:$0xff]  }
 0x25c   : > { %v2543_v35 = vpop.f32.mrf.mxu1  ;;  %v6749_v34 = vld [vmem:[#allocation8 + $0x5a8] ss:$12 sps:$4 sm:$0xff]   ;;  %v6750_v42 = vld [vmem:[#allocation8 + $0x3e0] ss:$12 sps:$4 sm:$0xff]   ;;  %v6753_v36 = vld [vmem:[#allocation8 + $0x590] ss:$12 sps:$4 sm:$0xff]  }
 0x25d   : > { %v2597_v6 = vmax.f32 %v2582_v9, 0.0  ;;  %v7343_v45 = vpack.c.bf16 %v2596_v27, %v2596_v27  ;;  %v6755_v9 = vld [vmem:[#allocation8 + $0x4d0] ss:$12 sps:$4 sm:$0xff]   ;;  %v6757_v27 = vld [vmem:[#allocation8 + $0x578] ss:$12 sps:$4 sm:$0xff]  }
 0x25e   : > { %5756 = vmatpush3.bf16.msra.mxu0 %v6704_v13  ;;  %v6756_v13 = vld [vmem:[#allocation8 + $0x308] ss:$12 sps:$4 sm:$0xff]   ;;  %v7352_v35 = vld [vmem:[#allocation10] sm:$0x7]  ;;  %v6759_v37 = vld [vmem:[#allocation8 + $0x770] ss:$12 sps:$4 sm:$0xff]  }
 0x25f   : > { %v7341_v41 = vpack.c.bf16 %v2597_v6, %v2597_v6  ;;  %5757 = vmatprep.subr.bf16.mxu0 %v6706_v38  ;;  %v2999_v38 = vrot.slane %v7352_v35, %v7243_v26  ;;  %v6758_v6 = vld [vmem:[#allocation8 + $0x4b8] ss:$12 sps:$4 sm:$0xff]  }
 0x261   : > { %4784 = vmatprep.mubr.bf16.mxu1 %v7341_v41 }
 0x262   : > { %4785 = vmatmul.mubr.bf16.vlgmr.msra.gmra.mxu1 %v7343_v45  ;;  %5758 = vmatpush3.bf16.msra.mxu0 %v6708_v43  ;;  %v3003_v43 = vrot.slane %v7352_v35, %v7253_v54  ;;  %v6767_v54 = vld [vmem:[#allocation8 + $0x740] ss:$12 sps:$4 sm:$0xff]  }
 0x263   : > { %5774 = vmatpush3.bf16.msra.mxu1 %v6707_v16  ;;  %4865 = vmatprep.mubr.bf16.mxu1 %v7271_v39  ;;  %v6722_v39 = vld [vmem:[#allocation8 + $0xc8] ss:$12 sps:$4 sm:$0xff]   ;;  %v6760_v16 = vld [vmem:[#allocation8 + $0x6b0] ss:$12 sps:$4 sm:$0xff]  }
 0x264   : > { %5775 = vmatprep.subr.bf16.mxu1 %v6709_v47  ;;  %5759 = vmatprep.subr.bf16.mxu0 %v6710_v48  ;;  %v6761_v47 = vld [vmem:[#allocation8 + $0x560] ss:$12 sps:$4 sm:$0xff]   ;;  %v6763_v48 = vld [vmem:[#allocation8 + $0x758] ss:$12 sps:$4 sm:$0xff]  }
 0x266   : > { %5760 = vmatpush3.bf16.msra.mxu0 %v6712_v52 }
 0x267   : > { %5776 = vmatpush3.bf16.msra.mxu1 %v6711_v51  ;;  %5761 = vmatprep.subr.bf16.mxu0 %v6714_v19  ;;  %v6762_v19 = vld [vmem:[#allocation8 + $0x4a0] ss:$12 sps:$4 sm:$0xff]  }
 0x268   : > { %5777 = vmatprep.subr.bf16.mxu1 %v6713_v55 }
 0x26a   : > { %5762 = vmatpush3.bf16.msra.mxu0 %v6716_v57  ;;  %v6765_v57 = vld [vmem:[#allocation8 + $0x548] ss:$12 sps:$4 sm:$0xff]  }
 0x26b   : > { %5778 = vmatpush3.bf16.msra.mxu1 %v6715_v56  ;;  %5763 = vmatprep.subr.bf16.mxu0 %v6718_v59  ;;  %v6764_v56 = vld [vmem:[#allocation8 + $0x698] ss:$12 sps:$4 sm:$0xff]  }
 0x26c   : > { %5779 = vmatprep.subr.bf16.mxu1 %v6717_v58 }
 0x26e   : > { %5764 = vmatpush3.bf16.msra.mxu0 %v6720_v62 }
 0x26f   : > { %5780 = vmatpush3.bf16.msra.mxu1 %v6719_v61  ;;  %5765 = vmatprep.subr.bf16.mxu0 %v6722_v39 }
 0x270   : > { %5781 = vmatprep.subr.bf16.mxu1 %v6721_v63 }
 0x272   : > { %5766 = vmatpush3.bf16.msra.mxu0 %v6724_v2  ;;  %v6769_v2 = vld [vmem:[#allocation8 + $0x8f0] ss:$12 sps:$4 sm:$0xff]  }
 0x273   : > { %5782 = vmatpush3.bf16.msra.mxu1 %v6723_v1  ;;  %5795 = vmatprep.subr.bf16.mxu0 %v6727_v3  ;;  %v6770_v3 = vld [vmem:[#allocation8 + $0x728] ss:$12 sps:$4 sm:$0xff]  }
 0x274   : > { %5783 = vmatprep.subr.bf16.mxu1 %v6725_v25 }
 0x275   : > { %4826 = vmatmul.mubr.bf16.vlgmr.msra.gmra.mxu0 %v7287_v20  ;;  %v6739_v20 = vld [vmem:[#allocation8 + $0x530] ss:$12 sps:$4 sm:$0xff]  }
 0x276   : > { %5796 = vmatpush3.bf16.msra.mxu0 %v6728_v7  ;;  %4905 = vmatprep.mubr.bf16.mxu0 %v7297_v12  ;;  %v6742_v12 = vld [vmem:[#allocation8 + $0x410] ss:$12 sps:$4 sm:$0xff]   ;;  %v6772_v7 = vld [vmem:[#allocation8 + $0x668] ss:$12 sps:$4 sm:$0xff]  }
 0x277   : > { %5784 = vmatpush3.bf16.msra.mxu1 %v6726_v4  ;;  %5797 = vmatprep.subr.bf16.mxu0 %v6731_v53  ;;  %v6771_v4 = vld [vmem:[#allocation8 + $0x830] ss:$12 sps:$4 sm:$0xff]  }
 0x278   : > { %5785 = vmatprep.subr.bf16.mxu1 %v6729_v10  ;;  %v6773_v10 = vld [vmem:[#allocation8 + $0x8d8] ss:$12 sps:$4 sm:$0xff]   ;;  %v6774_v53 = vld [vmem:[#allocation8 + $0x710] ss:$12 sps:$4 sm:$0xff]  }
 0x27a   : > { %5798 = vmatpush3.bf16.msra.mxu0 %v6732_v14  ;;  %v6776_v14 = vld [vmem:[#allocation8 + $0x650] ss:$12 sps:$4 sm:$0xff]  }
 0x27b   : > { %5786 = vmatpush3.bf16.msra.mxu1 %v6730_v11  ;;  %5799 = vmatprep.subr.bf16.mxu0 %v6735_v15  ;;  %v6775_v11 = vld [vmem:[#allocation8 + $0x818] ss:$12 sps:$4 sm:$0xff]  }
 0x27c   : > { %5787 = vmatprep.subr.bf16.mxu1 %v6733_v8  ;;  %v6777_v8 = vld [vmem:[#allocation8 + $0x8c0] ss:$12 sps:$4 sm:$0xff]   ;;  %v6778_v15 = vld [vmem:[#allocation8 + $0x6f8] ss:$12 sps:$4 sm:$0xff]  }
 0x27e   : > { %5800 = vmatpush3.bf16.msra.mxu0 %v6736_v17  ;;  %v6780_v17 = vld [vmem:[#allocation8 + $0x638] ss:$12 sps:$4 sm:$0xff]  }
 0x27f   : > { %5788 = vmatpush3.bf16.msra.mxu1 %v6734_v60  ;;  %5801 = vmatprep.subr.bf16.mxu0 %v6738_v22  ;;  %v6779_v60 = vld [vmem:[#allocation8 + $0x800] ss:$12 sps:$4 sm:$0xff]  }
 0x280   : > { %5817 = vmatprep.subr.bf16.mxu1 %v6737_v46  ;;  %v6781_v46 = vld [vmem:[#allocation8 + $0x8a8] ss:$12 sps:$4 sm:$0xff]   ;;  %v6782_v22 = vld [vmem:[#allocation8 + $0x6e0] ss:$12 sps:$4 sm:$0xff]  }
 0x282   : > { %4866 = vmatmul.mubr.bf16.vlgmr.msra.gmra.mxu1 %v7289_v0  ;;  %5802 = vmatpush3.bf16.msra.mxu0 %v6740_v23  ;;  %v6751_v0 = vld [vmem:[#allocation8 + $0x4e8] ss:$12 sps:$4 sm:$0xff]  }
 0x283   : > { %5818 = vmatpush3.bf16.msra.mxu1 %v6739_v20  ;;  %4945 = vmatprep.mubr.bf16.mxu1 %v7304_v5  ;;  %v6752_v5 = vld [vmem:[#allocation8 + $0x320] ss:$12 sps:$4 sm:$0xff]   ;;  %v6785_v20 = vld [vmem:[#allocation8 + $0x890] ss:$12 sps:$4 sm:$0xff]   ;;  %v6786_v23 = vld [vmem:[#allocation8 + $0x6c8] ss:$12 sps:$4 sm:$0xff]  }
 0x284   : > { %5819 = vmatprep.subr.bf16.mxu1 %v6741_v24  ;;  %5803 = vmatprep.subr.bf16.mxu0 %v6742_v12  ;;  %v6787_v24 = vld [vmem:[#allocation8 + $0x7d0] ss:$12 sps:$4 sm:$0xff]   ;;  %v6788_v12 = vld [vmem:[#allocation8 + $0x608] ss:$12 sps:$4 sm:$0xff]  }
 0x286   : > { %5804 = vmatpush3.bf16.msra.mxu0 %v6744_v29  ;;  %v6790_v29 = vld [vmem:[#allocation8 + $0x7b8] ss:$12 sps:$4 sm:$0xff]  }
 0x287   : > { %5820 = vmatpush3.bf16.msra.mxu1 %v6743_v28  ;;  %5805 = vmatprep.subr.bf16.mxu0 %v6746_v31  ;;  %v6789_v28 = vld [vmem:[#allocation8 + $0x878] ss:$12 sps:$4 sm:$0xff]   ;;  %v6792_v31 = vld [vmem:[#allocation8 + $0x7a0] ss:$12 sps:$4 sm:$0xff]  }
 0x288   : > { %5821 = vmatprep.subr.bf16.mxu1 %v6745_v30  ;;  %v6791_v30 = vld [vmem:[#allocation8 + $0x860] ss:$12 sps:$4 sm:$0xff]  }
 0x28a   : > { %5806 = vmatpush3.bf16.msra.mxu0 %v6748_v33  ;;  %v6794_v33 = vld [vmem:[#allocation8 + $0x788] ss:$12 sps:$4 sm:$0xff]  }
 0x28b   : > { %5822 = vmatpush3.bf16.msra.mxu1 %v6747_v32  ;;  %5807 = vmatprep.subr.bf16.mxu0 %v6750_v42  ;;  %v6793_v32 = vld [vmem:[#allocation8 + $0x848] ss:$12 sps:$4 sm:$0xff]  }
 0x28c   : > { %5823 = vmatprep.subr.bf16.mxu1 %v6749_v34 }
 0x28e   : > { %5808 = vmatpush3.bf16.msra.mxu0 %v6752_v5 }
 0x28f   : > { %5824 = vmatpush3.bf16.msra.mxu1 %v6751_v0  ;;  %5809 = vmatprep.subr.bf16.mxu0 %v6754_v21 }
 0x290   : > { %5825 = vmatprep.subr.bf16.mxu1 %v6753_v36 }
 0x292   : > { %5810 = vmatpush3.bf16.msra.mxu0 %v6756_v13 }
 0x293   : > { %5826 = vmatpush3.bf16.msra.mxu1 %v6755_v9  ;;  %5839 = vmatprep.subr.bf16.mxu0 %v6759_v37 }
 0x294   : > { %5827 = vmatprep.subr.bf16.mxu1 %v6757_v27 }
 0x295   : > { %v4581_v51 = vpop.f32.mrf.mxu0  ;;  %4906 = vmatmul.mubr.bf16.vlgmr.msra.gmra.mxu0 %v7311_v40  ;;  %v6766_v40 = vld [vmem:[#allocation8 + $0x488] ss:$12 sps:$4 sm:$0xff]  }
 0x296   : > { %v4582_v52 = vadd.f32 %v4581_v51, %v2999_v38  ;;  %v4622_v55 = vpop.f32.mrf.mxu1  ;;  %5840 = vmatpush3.bf16.msra.mxu0 %v6760_v16  ;;  %4985 = vmatprep.mubr.bf16.mxu0 %v7326_v50  ;;  %v6768_v50 = vld [vmem:[#allocation8 + $0x680] ss:$12 sps:$4 sm:$0xff]  }
 0x297   : > { %5828 = vmatpush3.bf16.msra.mxu1 %v6758_v6  ;;  %v4583_v26 = vpop.f32.mrf.mxu0  ;;  %5841 = vmatprep.subr.bf16.mxu0 %v6763_v48 }
 0x298   : > { %v7360_v58 = vadd.f32 %v4622_v55, %v4582_v52  ;;  %v4584_v59 = vadd.f32 %v4583_v26, %v3003_v43  ;;  %v4624_v61 = vpop.f32.mrf.mxu1  ;;  %5829 = vmatprep.subr.bf16.mxu1 %v6761_v47 }
 0x299   : > { %v4585_v62 = vpop.f32.mrf.mxu0 }
 0x29a   : > { %v7362_v63 = vadd.f32 %v4624_v61, %v4584_v59  ;;  %v4626_v39 = vpop.f32.mrf.mxu1  ;;  %5842 = vmatpush3.bf16.msra.mxu0 %v6764_v56 }
 0x29b   : > { %5830 = vmatpush3.bf16.msra.mxu1 %v6762_v19  ;;  %v4586_v1 = vpop.f32.mrf.mxu0  ;;  %5843 = vmatprep.subr.bf16.mxu0 %v6767_v54 }
 0x29c   : > { %5831 = vmatprep.subr.bf16.mxu1 %v6765_v57  ;;  %v4627_v25 = vpop.f32.mrf.mxu1 }
 0x29e   : > { %5844 = vmatpush3.bf16.msra.mxu0 %v6768_v50 }
 0x29f   : > { %5832 = vmatpush3.bf16.msra.mxu1 %v6766_v40  ;;  %5845 = vmatprep.subr.bf16.mxu0 %v6770_v3 }
 0x2a0   : > { %5861 = vmatprep.subr.bf16.mxu1 %v6769_v2 }
 0x2a2   : > { %4946 = vmatmul.mubr.bf16.vlgmr.msra.gmra.mxu1 %v7313_v44  ;;  %5846 = vmatpush3.bf16.msra.mxu0 %v6772_v7  ;;  %v6783_v44 = vld [vmem:[#allocation8 + $0x7e8] ss:$12 sps:$4 sm:$0xff]  }
 0x2a3   : > { %5862 = vmatpush3.bf16.msra.mxu1 %v6771_v4  ;;  %5025 = vmatprep.mubr.bf16.mxu1 %v7341_v41  ;;  %v6784_v41 = vld [vmem:[#allocation8 + $0x620] ss:$12 sps:$4 sm:$0xff]  }
 0x2a4   : > { %5863 = vmatprep.subr.bf16.mxu1 %v6773_v10  ;;  %5847 = vmatprep.subr.bf16.mxu0 %v6774_v53 }
 0x2a6   : > { %5848 = vmatpush3.bf16.msra.mxu0 %v6776_v14 }
 0x2a7   : > { %5864 = vmatpush3.bf16.msra.mxu1 %v6775_v11  ;;  %5849 = vmatprep.subr.bf16.mxu0 %v6778_v15  ;;  %v3007_v11 = vrot.slane %v7352_v35, %v7275_v49 }
 0x2a8   : > { %5865 = vmatprep.subr.bf16.mxu1 %v6777_v8 }
 0x2aa   : > { %5850 = vmatpush3.bf16.msra.mxu0 %v6780_v17 }
 0x2ab   : > { %5866 = vmatpush3.bf16.msra.mxu1 %v6779_v60  ;;  %5851 = vmatprep.subr.bf16.mxu0 %v6782_v22 }
 0x2ac   : > { %5867 = vmatprep.subr.bf16.mxu1 %v6781_v46 }
 0x2ae   : > { %5852 = vmatpush3.bf16.msra.mxu0 %v6784_v41 }
 0x2af   : > { %5868 = vmatpush3.bf16.msra.mxu1 %v6783_v44  ;;  %5853 = vmatprep.subr.bf16.mxu0 %v6786_v23 }
 0x2b0   : > { %5869 = vmatprep.subr.bf16.mxu1 %v6785_v20 }
 0x2b2   : > { %5854 = vmatpush3.bf16.msra.mxu0 %v6788_v12 }
 0x2b3   : > { %5870 = vmatpush3.bf16.msra.mxu1 %v6787_v24 }
 0x2b4   : > { %5871 = vmatprep.subr.bf16.mxu1 %v6789_v28 }
 0x2b5   : > { %4986 = vmatmul.mubr.bf16.vlgmr.msra.gmra.mxu0 %v7334_v18 }
 0x2b7   : > { %5872 = vmatpush3.bf16.msra.mxu1 %v6790_v29 }
 0x2b8   : > { %5873 = vmatprep.subr.bf16.mxu1 %v6791_v30 }
 0x2bb   : > { %5874 = vmatpush3.bf16.msra.mxu1 %v6792_v31 }
 0x2bc   : > { %5875 = vmatprep.subr.bf16.mxu1 %v6793_v32 }
 0x2bf   : > { %5876 = vmatpush3.bf16.msra.mxu1 %v6794_v33 }
 0x2c2   : > { %5026 = vmatmul.mubr.bf16.vlgmr.msra.gmra.mxu1 %v7343_v45 }
 0x2d5   : > { %v4663_v34 = vpop.f32.mrf.mxu0 }
 0x2d6   : > { %v4664_v42 = vadd.f32 %v4663_v34, %v7360_v58  ;;  %v4704_v0 = vpop.f32.mrf.mxu1 }
 0x2d7   : > { %v4665_v5 = vpop.f32.mrf.mxu0 }
 0x2d8   : > { %v4705_v36 = vadd.f32 %v4704_v0, %v4664_v42  ;;  %v4666_v21 = vadd.f32 %v4665_v5, %v7362_v63  ;;  %v4706_v18 = vpop.f32.mrf.mxu1 }
 0x2d9   : > { %v4667_v9 = vpop.f32.mrf.mxu0 }
 0x2da   : > { %v4707_v13 = vadd.f32 %v4706_v18, %v4666_v21  ;;  %v4708_v27 = vpop.f32.mrf.mxu1 }
 0x2db   : > { %v4668_v37 = vpop.f32.mrf.mxu0 }
 0x2dc   : > { %v4709_v38 = vpop.f32.mrf.mxu1 }
 0x315   : > { %v4745_v6 = vpop.f32.mrf.mxu0 }
 0x316   : > { %v4746_v45 = vadd.f32 %v4745_v6, %v4705_v36 }
 0x317   : > { %v4747_v16 = vpop.f32.mrf.mxu0 }
 0x318   : > { %v4748_v51 = vadd.f32 %v4747_v16, %v4707_v13 }
 0x319   : > { %v4749_v43 = vpop.f32.mrf.mxu0 }
 0x31b   : > { %v4750_v47 = vpop.f32.mrf.mxu0 }
 0x322   : > { %v4786_v48 = vpop.f32.mrf.mxu1 }
 0x323   : > { %v4787_v52 = vadd.f32 %v4786_v48, %v4746_v45 }
 0x324   : > { %v4788_v55 = vpop.f32.mrf.mxu1 }
 0x325   : > { %5033 = vst [vmem:[%s7372_s25] sm:$0xff] %v4787_v52  ;;  %v4789_v19 = vadd.f32 %v4788_v55, %v4748_v51 }
 0x326   : > { %v4790_v26 = vpop.f32.mrf.mxu1 }
 0x327   : > { %5034 = vst [vmem:[%s7372_s25 + $0x8] sm:$0xff] %v4789_v19 }
 0x328   : > { %v4791_v56 = vpop.f32.mrf.mxu1 }
 0x335   : > { %v5767_v57 = vpop.f32.mrf.mxu0 }
 0x337   : > { %v5768_v58 = vpop.f32.mrf.mxu0 }
 0x338   : > { %v5769_v59 = vadd.f32 %v5768_v58, %v5767_v57 }
 0x339   : > { %v5770_v61 = vpop.f32.mrf.mxu0 }
 0x33a   : > { %v4828_v60 = vadd.f32 %v5769_v59, %v3007_v11 }
 0x33b   : > { %v5771_v54 = vpop.f32.mrf.mxu0 }
 0x342   : > { %v5789_v62 = vpop.f32.mrf.mxu1 }
 0x344   : > { %v5790_v63 = vpop.f32.mrf.mxu1 }
 0x345   : > { %v5791_v8 = vadd.f32 %v5790_v63, %v5789_v62 }
 0x346   : > { %v5792_v39 = vpop.f32.mrf.mxu1 }
 0x347   : > { %v4868_v22 = vadd.f32 %v5791_v8, %v4828_v60 }
 0x348   : > { %v5793_v40 = vpop.f32.mrf.mxu1 }
 0x355   : > { %v5811_v1 = vpop.f32.mrf.mxu0 }
 0x357   : > { %v5812_v50 = vpop.f32.mrf.mxu0 }
 0x358   : > { %v5813_v17 = vadd.f32 %v5812_v50, %v5811_v1 }
 0x359   : > { %v5814_v2 = vpop.f32.mrf.mxu0 }
 0x35a   : > { %v4908_v41 = vadd.f32 %v5813_v17, %v4868_v22 }
 0x35b   : > { %v5815_v25 = vpop.f32.mrf.mxu0 }
 0x362   : > { %v5833_v3 = vpop.f32.mrf.mxu1 }
 0x364   : > { %v5834_v4 = vpop.f32.mrf.mxu1 }
 0x365   : > { %v5835_v44 = vadd.f32 %v5834_v4, %v5833_v3 }
 0x366   : > { %v5836_v7 = vpop.f32.mrf.mxu1 }
 0x367   : > { %v4948_v24 = vadd.f32 %v5835_v44, %v4908_v41 }
 0x368   : > { %v5837_v10 = vpop.f32.mrf.mxu1 }
 0x375   : > { %v5855_v53 = vpop.f32.mrf.mxu0 }
 0x377   : > { %v5856_v14 = vpop.f32.mrf.mxu0 }
 0x378   : > { %v5857_v20 = vadd.f32 %v5856_v14, %v5855_v53 }
 0x379   : > { %v5858_v15 = vpop.f32.mrf.mxu0 }
 0x37a   : > { %v4988_v28 = vadd.f32 %v5857_v20, %v4948_v24 }
 0x37b   : > { %v5859_v46 = vpop.f32.mrf.mxu0 }
 0x382   : > { %v5877_v23 = vpop.f32.mrf.mxu1 }
 0x384   : > { %v5878_v12 = vpop.f32.mrf.mxu1 }
 0x385   : > { %v5879_v49 = vadd.f32 %v5878_v12, %v5877_v23 }
 0x386   : > { %v5880_v35 = vpop.f32.mrf.mxu1 }
 0x387   : > { %v5028_v29 = vadd.f32 %v5879_v49, %v4988_v28 }
 0x388   : > { %v5881_v30 = vpop.f32.mrf.mxu1 }
 0x389   : > { %5035 = vst [vmem:[%s7372_s25 + $0x10] sm:$0xff] %v5028_v29 }
 0x38a   : > { %6941 = shalt.err (!%p6938_p11)
}
 0x38b   : > { %s6942_s23 = scalar_lea.hbm %s7383_s6, 384  ;;  %s6946_s30 = scalar_lea.hbm %s7426_s5, 768 }
 0x38c   : > { %p6943_p12 = scmp.ne.s32.totalorder %s7383_s6, %s6942_s23  ;;  %p6947_p4 = scmp.lt.s32.totalorder %s7383_s6, %s7426_s5 }
 0x38d   : > { %p6948_p13 = scmp.lt.s32.totalorder %s6946_s30, %s6942_s23 }
 0x38e   : > { %p6944_p1 = pnand %p6943_p12, %p7443_p7 }
 0x38f   : > { %p6949_p5 = por %p6948_p13, %p6947_p4 }
 0x390   : > { %p6945_p3 = pneg %p6944_p1 }
 0x392   : > { %p6950_p8 = pnand %p6949_p5, %p6945_p3 }
 0x394   : > { %6953 = shalt.err (!%p6950_p8)
}
 0x395   : > { %5905 = dma.vmem_to_hbm [thread:$0]  (%p7443_p7), %s5052_s17, 384, %s7383_s6, %s5037_s22  }
 0x396 PF: > { %s5063_s25 = sand.u32 1, %s6988_s18   ;;  %p7444_p10 = scmp.ne.s32.totalorder %s7435_s14, 0 }
 0x397   : > { %p7445_p6 = scmp.ge.s32.totalorder %s7000_s21, 2  ;;  %s5064_s11 = scalar_lea.sflag [#allocation4], %s5063_s25 }
 0x399   : > { %p5925_p0 = pnand %p7445_p6, %p7444_p10 }
 0x39b   : > { %p5926_p2 = pneg %p5925_p0 }
 0x39d   : > { %6983 = dma.done.wait (%p5926_p2), %s5064_s11, 384  }
 0x39e   : > { %6985 = vsyncadd (%p5926_p2), %s5064_s11, 4294966912  ;;  %p20_p9 = scmp.ge.s32.totalorder %s7128_s28, 4   ;;  %s7446_s18 = smov %s6992_s19 }
 0x39f   : > { %s7447_s19 = smov %s6996_s20  ;;  %s7448_s20 = smov %s7139_s10 }
 0x3a0   : > { %s7449_s21 = smov %s7128_s28  ;;  %22 = sbr.rel (!%p20_p9) target bundleno = 7 (0x7), region = 101 }
 0x3a5   :  { %5069 = vsyncpa [#allocation3], 1 }
 0x3a6   :  { %5071 = vsyncpa [#allocation3 + $0x1], 1 }
 0x3a7   :  { %5072 = vsyncpa [#allocation6], 1 }
 0x3a8   :  { %5073 = vsyncpa [#allocation9], 1 }
 0x3a9   :  { %5074 = vsyncpa [#allocation4], 1 }
 0x3aa   :  { %5076 = vsyncpa [#allocation4 + $0x1], 1 }

</bundles_post_ra>
